<compile_context>
chip_gen: v7x
topology: tpu7x:2x2x1
jax: 0.10.0
libtpu: 0.0.40
codegen_flags: <defaults>
</compile_context>

<pallas_src>
import functools

import jax
import jax.numpy as jnp
from jax.experimental import pallas as pl
from jax.experimental.pallas import tpu as pltpu


# ---------------------------------------------------------------------------
# Fused residual-stack kernel: all blocks, all taps, LN, ReLU, residual
# ---------------------------------------------------------------------------
def _stack_kernel(x_ref, w_ref, p_ref, o_ref, *, dilations, K, C, eps):
    """One batch tile through the whole NextItNet stack.

    Block shapes per grid step:
      x_ref : (TB, L, Cp)       bf16 embedded inputs (channel-padded to Cp)
      w_ref : (2*nblk, K*Cp, Cp) bf16 conv weights, taps flattened on C_in
      p_ref : (2*nblk, 3, Cp)   f32  [bias, gamma, beta] per conv
      o_ref : (TB, L, Cp)       bf16 stack output
    """
    TB, L, Cp = x_ref.shape
    M = TB * L

    lane = jax.lax.broadcasted_iota(jnp.int32, (1, Cp), 1)
    cmask = (lane < C).astype(jnp.float32)          # mask padded lanes in LN var
    inv_c = 1.0 / C

    x = x_ref[...].astype(jnp.float32).reshape(M, Cp)

    def conv_ln_relu(h, conv_idx, dilation):
        # Build K causally-shifted views (zero fill at the top) and fuse the
        # taps into a single (M, K*Cp) @ (K*Cp, Cp) MXU matmul.
        h3 = h.reshape(TB, L, Cp)
        parts = []
        for k in range(K):                          # static unrolled taps
            s = (K - 1 - k) * dilation
            if s == 0:
                parts.append(h3)
            elif s >= L:
                parts.append(jnp.zeros((TB, L, Cp), jnp.float32))
            else:
                parts.append(jnp.concatenate(
                    [jnp.zeros((TB, s, Cp), jnp.float32), h3[:, :L - s, :]],
                    axis=1))
        xcat = jnp.concatenate(parts, axis=-1)      # (TB, L, K*Cp)
        xcat = xcat.reshape(M, K * Cp).astype(jnp.bfloat16)

        acc = jnp.dot(xcat, w_ref[conv_idx],
                      preferred_element_type=jnp.float32)      # (M, Cp) f32
        prm = p_ref[conv_idx]                                  # (3, Cp) f32
        acc = acc + prm[0:1, :]                                # conv bias

        # LayerNorm over the real C channels (padded lanes are exactly zero).
        mean = jnp.sum(acc, axis=-1, keepdims=True) * inv_c
        cen = acc - mean
        var = jnp.sum(cen * cen * cmask, axis=-1, keepdims=True) * inv_c
        hn = cen * jax.lax.rsqrt(var + eps)
        hn = hn * prm[1:2, :] + prm[2:3, :]                    # gamma, beta
        return jnp.maximum(hn, 0.0)                            # ReLU

    for bi, d in enumerate(dilations):              # static unrolled blocks
        res = x
        h = conv_ln_relu(x, 2 * bi, d)
        x = conv_ln_relu(h, 2 * bi + 1, 2 * d) + res

    o_ref[...] = x.reshape(TB, L, Cp).astype(o_ref.dtype)


# ---------------------------------------------------------------------------
# Logits kernel: (B, C) @ renorm(E)^T, tiled over the item dimension
# ---------------------------------------------------------------------------
def _logits_kernel(h_ref, e_ref, o_ref, *, max_norm):
    """o = h @ (renorm(E_tile))^T with nn.Embedding(max_norm=1) fused in."""
    e = e_ref[...].astype(jnp.float32)              # (TN, C) raw embedding rows
    nrm = jnp.sqrt(jnp.sum(e * e, axis=-1, keepdims=True))
    scale = jnp.where(nrm > max_norm, max_norm / (nrm + 1e-7), 1.0)
    e_scaled = (e * scale).astype(jnp.bfloat16)     # (TN, C)
    h = h_ref[...].astype(jnp.bfloat16)             # (B, C)
    o_ref[...] = jax.lax.dot_general(
        h, e_scaled, (((1,), (1,)), ((), ())),
        preferred_element_type=jnp.float32)         # (B, TN)


# ---------------------------------------------------------------------------
# Model: parameter init + forward (glue in plain JAX, hot paths in Pallas)
# ---------------------------------------------------------------------------
def init_params(key, num_items, embedding_dim, dilations, kernel_size):
    ks = jax.random.split(key, 2 + 4 * len(dilations))
    params = {
        # nn.Embedding(num_items, embedding_dim, max_norm=1)
        "embedding": jax.random.normal(ks[0], (num_items, embedding_dim),
                                       jnp.float32) * 0.5,
        # nn.Linear(embedding_dim, embedding_dim, bias=False): weight (out, in)
        "fc_sr": jax.random.normal(ks[1], (embedding_dim, embedding_dim),
                                   jnp.float32) * 0.1,
        "blocks": [],
    }
    ki = 2
    for _ in dilations:
        blk = {}
        for which in ("1", "2"):
            # PyTorch Conv1d weight layout: (C_out, C_in, K)
            blk[f"w{which}"] = jax.random.normal(
                ks[ki], (embedding_dim, embedding_dim, kernel_size),
                jnp.float32) * 0.1
            blk[f"b{which}"] = jax.random.normal(
                ks[ki + 1], (embedding_dim,), jnp.float32) * 0.05
            blk[f"g{which}"] = jnp.ones((embedding_dim,), jnp.float32)
            blk[f"be{which}"] = jnp.zeros((embedding_dim,), jnp.float32)
            ki += 2
        params["blocks"].append(blk)
    return params


def _round_up(x, m):
    return (x + m - 1) // m * m


def nextitnet_forward(params, uids, padded_seqs, lens, *, dilations,
                      kernel_size):
    del uids  # unused in the reference forward as well
    B, L = padded_seqs.shape
    emb = params["embedding"]                       # (N, C) f32
    N, C = emb.shape
    K = kernel_size
    nblk = len(dilations)
    Cp = _round_up(max(C, 128), 128)                # lane-pad channels to 128

    # --- embedding lookup; max_norm=1 renorm applied to the gathered rows ---
    rows = emb[padded_seqs]                                     # (B, L, C)
    nrm = jnp.sqrt(jnp.sum(rows * rows, axis=-1, keepdims=True))
    rows = rows * jnp.where(nrm > 1.0, 1.0 / (nrm + 1e-7), 1.0)
    x = jnp.pad(rows, ((0, 0), (0, 0), (0, Cp - C))).astype(jnp.bfloat16)
    # feat_drop = nn.Dropout(0.0) -> identity.

    # --- pack all conv weights / LN params once (small, resident in VMEM) ---
    w_list, p_list = [], []
    for blk in params["blocks"]:
        for which in ("1", "2"):
            w = blk[f"w{which}"]                                # (C_out, C_in, K)
            wt = jnp.transpose(w, (2, 1, 0))                    # (K, C_in, C_out)
            wt = jnp.pad(wt, ((0, 0), (0, Cp - C), (0, Cp - C)))
            w_list.append(wt.reshape(K * Cp, Cp))
            b = jnp.pad(blk[f"b{which}"], (0, Cp - C))
            g = jnp.pad(blk[f"g{which}"], (0, Cp - C))
            be = jnp.pad(blk[f"be{which}"], (0, Cp - C))
            p_list.append(jnp.stack([b, g, be], axis=0))
    w_all = jnp.stack(w_list, 0).astype(jnp.bfloat16)           # (2*nblk, K*Cp, Cp)
    p_all = jnp.stack(p_list, 0).astype(jnp.float32)            # (2*nblk, 3, Cp)

    # --- batch tiling: TB sequences (TB*L matmul rows) per grid step ---------
    TB = min(B, max(1, 256 // L))
    Bp = pl.cdiv(B, TB) * TB
    if Bp != B:
        x = jnp.pad(x, ((0, Bp - B), (0, 0), (0, 0)))

    y = pl.pallas_call(
        functools.partial(_stack_kernel, dilations=tuple(dilations), K=K, C=C,
                          eps=1e-5),
        out_shape=jax.ShapeDtypeStruct((Bp, L, Cp), jnp.bfloat16),
        grid=(Bp // TB,),
        in_specs=[
            pl.BlockSpec((TB, L, Cp), lambda i: (i, 0, 0)),
            pl.BlockSpec((2 * nblk, K * Cp, Cp), lambda i: (0, 0, 0)),
            pl.BlockSpec((2 * nblk, 3, Cp), lambda i: (0, 0, 0)),
        ],
        out_specs=pl.BlockSpec((TB, L, Cp), lambda i: (i, 0, 0)),
        compiler_params=pltpu.CompilerParams(
            dimension_semantics=("parallel",),
            vmem_limit_bytes=32 * 1024 * 1024),
    )(x, w_all, p_all)

    # --- session representation: hidden state at last valid position (glue) --
    sr = y[jnp.arange(B), lens - 1, :C].astype(jnp.float32)     # (B, C)
    h = sr @ params["fc_sr"].T                                  # tiny, plain JAX

    # --- logits = fc_sr(sr) @ renorm(E)^T, tiled over the item dimension -----
    TN = min(512, N)
    logits = pl.pallas_call(
        functools.partial(_logits_kernel, max_norm=1.0),
        out_shape=jax.ShapeDtypeStruct((B, N), jnp.float32),
        grid=(pl.cdiv(N, TN),),
        in_specs=[
            pl.BlockSpec((B, C), lambda j: (0, 0)),
            pl.BlockSpec((TN, C), lambda j: (j, 0)),
        ],
        out_specs=pl.BlockSpec((B, TN), lambda j: (0, j)),
        compiler_params=pltpu.CompilerParams(
            dimension_semantics=("parallel",),
            vmem_limit_bytes=32 * 1024 * 1024),
    )(h, emb)
    return logits


# ---------------------------------------------------------------------------
if __name__ == "__main__":
    num_items = 64
    embedding_dim = 32
    kernel_size = 3
    dilations = [1, 2]
    B, L = 2, 8

    key = jax.random.PRNGKey(0)
    k_params, k_seq = jax.random.split(key)
    params = init_params(k_params, num_items, embedding_dim, dilations,
                         kernel_size)

    lens = jnp.array([8, 5], dtype=jnp.int32)
    seqs = jax.random.randint(k_seq, (B, L), 1, num_items, dtype=jnp.int32)
    pos = jnp.arange(L)[None, :]
    padded_seqs = jnp.where(pos < lens[:, None], seqs, 0)   # right-pad with 0
    uids = jnp.arange(B, dtype=jnp.int32)

    fwd = jax.jit(functools.partial(nextitnet_forward,
                                    dilations=tuple(dilations),
                                    kernel_size=kernel_size))
    logits = fwd(params, uids, padded_seqs, lens)
    jax.block_until_ready(logits)
    assert logits.shape == (B, num_items)
    assert bool(jnp.all(jnp.isfinite(logits)))
    print("KERNEL_OK")
</pallas_src>

<mosaic_0001>
module attributes {stable_mosaic.version = 11 : i64} {
  func.func @_stack_kernel(%arg0: i32, %arg1: memref<2x8x128xbf16, #tpu.memory_space<vmem>>, %arg2: memref<4x384x128xbf16, #tpu.memory_space<vmem>>, %arg3: memref<4x3x128xf32, #tpu.memory_space<vmem>>, %arg4: memref<2x8x128xbf16, #tpu.memory_space<vmem>>) attributes {dimension_semantics = [#tpu.dimension_semantics<parallel>], iteration_bounds = array<i64: 1>, scalar_prefetch = 0 : i64, scratch_operands = 0 : i64, tpu.core_type = #tpu.core_type<tc>, window_params = [{transform_indices = @transform_0, window_bounds = array<i64: 2, 8, 128>}, {pipeline_mode = #tpu.pipeline_mode<synchronous>, transform_indices = @transform_1, window_bounds = array<i64: 4, 384, 128>}, {pipeline_mode = #tpu.pipeline_mode<synchronous>, transform_indices = @transform_2, window_bounds = array<i64: 4, 3, 128>}, {transform_indices = @transform_3, window_bounds = array<i64: 2, 8, 128>}]} {
    %0 = tpu.iota {dimensions = array<i32: 1>} : vector<1x128xi32>
    %c32_i32 = arith.constant 32 : i32
    %1 = vector.broadcast %c32_i32 : i32 to vector<1x128xi32>
    %2 = arith.cmpi slt, %0, %1 : vector<1x128xi32>
    %3 = arith.extui %2 : vector<1x128xi1> to vector<1x128xi32>
    %4 = arith.sitofp %3 : vector<1x128xi32> to vector<1x128xf32>
    %c0 = arith.constant 0 : index
    %c0_0 = arith.constant 0 : index
    %c0_1 = arith.constant 0 : index
    %5 = vector.load %arg1[%c0, %c0_0, %c0_1] : memref<2x8x128xbf16, #tpu.memory_space<vmem>>, vector<2x8x128xbf16>
    %6 = arith.extf %5 : vector<2x8x128xbf16> to vector<2x8x128xf32>
    %7 = vector.shape_cast %6 : vector<2x8x128xf32> to vector<16x128xf32>
    %8 = vector.shape_cast %7 : vector<16x128xf32> to vector<2x8x128xf32>
    %cst = arith.constant 0.000000e+00 : f32
    %9 = vector.broadcast %cst : f32 to vector<2x2x128xf32>
    %10 = vector.extract_strided_slice %8 {offsets = [0, 0, 0], sizes = [2, 6, 128], strides = [1, 1, 1]} : vector<2x8x128xf32> to vector<2x6x128xf32>
    %11 = tpu.concatenate %9, %10 in 1 : vector<2x2x128xf32>, vector<2x6x128xf32> -> vector<2x8x128xf32>
    %cst_2 = arith.constant 0.000000e+00 : f32
    %12 = vector.broadcast %cst_2 : f32 to vector<2x1x128xf32>
    %13 = vector.extract_strided_slice %8 {offsets = [0, 0, 0], sizes = [2, 7, 128], strides = [1, 1, 1]} : vector<2x8x128xf32> to vector<2x7x128xf32>
    %14 = tpu.concatenate %12, %13 in 1 : vector<2x1x128xf32>, vector<2x7x128xf32> -> vector<2x8x128xf32>
    %15 = tpu.concatenate %11, %14, %8 in 2 : vector<2x8x128xf32>, vector<2x8x128xf32>, vector<2x8x128xf32> -> vector<2x8x384xf32>
    %16 = vector.shape_cast %15 : vector<2x8x384xf32> to vector<16x384xf32>
    %17 = arith.truncf %16 : vector<16x384xf32> to vector<16x384xbf16>
    %c0_3 = arith.constant 0 : index
    %c0_4 = arith.constant 0 : index
    %c0_5 = arith.constant 0 : index
    %18 = vector.load %arg2[%c0_3, %c0_4, %c0_5] : memref<4x384x128xbf16, #tpu.memory_space<vmem>>, vector<1x384x128xbf16>
    %19 = vector.shape_cast %18 : vector<1x384x128xbf16> to vector<384x128xbf16>
    %cst_6 = arith.constant dense<0.000000e+00> : vector<16x128xf32>
    %20 = tpu.matmul %17, %19, %cst_6 {dimension_numbers = #tpu.dot_dimension_numbers<[1], [0], [0], [1], [0, 0, 1, 1], [], []>} : vector<16x384xbf16>, vector<384x128xbf16>, vector<16x128xf32> -> vector<16x128xf32>
    %c0_7 = arith.constant 0 : index
    %c0_8 = arith.constant 0 : index
    %c0_9 = arith.constant 0 : index
    %21 = vector.load %arg3[%c0_7, %c0_8, %c0_9] : memref<4x3x128xf32, #tpu.memory_space<vmem>>, vector<1x3x128xf32>
    %22 = vector.shape_cast %21 : vector<1x3x128xf32> to vector<3x128xf32>
    %23 = vector.extract_strided_slice %22 {offsets = [0, 0], sizes = [1, 128], strides = [1, 1]} : vector<3x128xf32> to vector<1x128xf32>
    %24 = vector.broadcast %23 : vector<1x128xf32> to vector<16x128xf32>
    %25 = arith.addf %20, %24 : vector<16x128xf32>
    %cst_10 = arith.constant dense<0.000000e+00> : vector<16xf32>
    %26 = vector.multi_reduction <add>, %25, %cst_10 [1] : vector<16x128xf32> to vector<16xf32>
    %27 = vector.shape_cast %26 : vector<16xf32> to vector<16x1xf32>
    %cst_11 = arith.constant 3.125000e-02 : f32
    %28 = vector.broadcast %cst_11 : f32 to vector<16x1xf32>
    %29 = arith.mulf %27, %28 : vector<16x1xf32>
    %30 = vector.broadcast %29 : vector<16x1xf32> to vector<16x128xf32>
    %31 = arith.subf %25, %30 : vector<16x128xf32>
    %32 = arith.mulf %31, %31 : vector<16x128xf32>
    %33 = vector.broadcast %4 : vector<1x128xf32> to vector<16x128xf32>
    %34 = arith.mulf %32, %33 : vector<16x128xf32>
    %cst_12 = arith.constant dense<0.000000e+00> : vector<16xf32>
    %35 = vector.multi_reduction <add>, %34, %cst_12 [1] : vector<16x128xf32> to vector<16xf32>
    %36 = vector.shape_cast %35 : vector<16xf32> to vector<16x1xf32>
    %cst_13 = arith.constant 3.125000e-02 : f32
    %37 = vector.broadcast %cst_13 : f32 to vector<16x1xf32>
    %38 = arith.mulf %36, %37 : vector<16x1xf32>
    %cst_14 = arith.constant 9.99999974E-6 : f32
    %39 = vector.broadcast %cst_14 : f32 to vector<16x1xf32>
    %40 = arith.addf %38, %39 : vector<16x1xf32>
    %41 = math.rsqrt %40 : vector<16x1xf32>
    %42 = vector.broadcast %41 : vector<16x1xf32> to vector<16x128xf32>
    %43 = arith.mulf %31, %42 : vector<16x128xf32>
    %44 = vector.extract_strided_slice %22 {offsets = [1, 0], sizes = [1, 128], strides = [1, 1]} : vector<3x128xf32> to vector<1x128xf32>
    %45 = vector.broadcast %44 : vector<1x128xf32> to vector<16x128xf32>
    %46 = arith.mulf %43, %45 : vector<16x128xf32>
    %47 = vector.extract_strided_slice %22 {offsets = [2, 0], sizes = [1, 128], strides = [1, 1]} : vector<3x128xf32> to vector<1x128xf32>
    %48 = vector.broadcast %47 : vector<1x128xf32> to vector<16x128xf32>
    %49 = arith.addf %46, %48 : vector<16x128xf32>
    %cst_15 = arith.constant 0.000000e+00 : f32
    %50 = vector.broadcast %cst_15 : f32 to vector<16x128xf32>
    %51 = arith.maximumf %49, %50 : vector<16x128xf32>
    %52 = vector.shape_cast %51 : vector<16x128xf32> to vector<2x8x128xf32>
    %cst_16 = arith.constant 0.000000e+00 : f32
    %53 = vector.broadcast %cst_16 : f32 to vector<2x4x128xf32>
    %54 = vector.extract_strided_slice %52 {offsets = [0, 0, 0], sizes = [2, 4, 128], strides = [1, 1, 1]} : vector<2x8x128xf32> to vector<2x4x128xf32>
    %55 = tpu.concatenate %53, %54 in 1 : vector<2x4x128xf32>, vector<2x4x128xf32> -> vector<2x8x128xf32>
    %cst_17 = arith.constant 0.000000e+00 : f32
    %56 = vector.broadcast %cst_17 : f32 to vector<2x2x128xf32>
    %57 = vector.extract_strided_slice %52 {offsets = [0, 0, 0], sizes = [2, 6, 128], strides = [1, 1, 1]} : vector<2x8x128xf32> to vector<2x6x128xf32>
    %58 = tpu.concatenate %56, %57 in 1 : vector<2x2x128xf32>, vector<2x6x128xf32> -> vector<2x8x128xf32>
    %59 = tpu.concatenate %55, %58, %52 in 2 : vector<2x8x128xf32>, vector<2x8x128xf32>, vector<2x8x128xf32> -> vector<2x8x384xf32>
    %60 = vector.shape_cast %59 : vector<2x8x384xf32> to vector<16x384xf32>
    %61 = arith.truncf %60 : vector<16x384xf32> to vector<16x384xbf16>
    %c1 = arith.constant 1 : index
    %c0_18 = arith.constant 0 : index
    %c0_19 = arith.constant 0 : index
    %62 = vector.load %arg2[%c1, %c0_18, %c0_19] : memref<4x384x128xbf16, #tpu.memory_space<vmem>>, vector<1x384x128xbf16>
    %63 = vector.shape_cast %62 : vector<1x384x128xbf16> to vector<384x128xbf16>
    %cst_20 = arith.constant dense<0.000000e+00> : vector<16x128xf32>
    %64 = tpu.matmul %61, %63, %cst_20 {dimension_numbers = #tpu.dot_dimension_numbers<[1], [0], [0], [1], [0, 0, 1, 1], [], []>} : vector<16x384xbf16>, vector<384x128xbf16>, vector<16x128xf32> -> vector<16x128xf32>
    %c1_21 = arith.constant 1 : index
    %c0_22 = arith.constant 0 : index
    %c0_23 = arith.constant 0 : index
    %65 = vector.load %arg3[%c1_21, %c0_22, %c0_23] : memref<4x3x128xf32, #tpu.memory_space<vmem>>, vector<1x3x128xf32>
    %66 = vector.shape_cast %65 : vector<1x3x128xf32> to vector<3x128xf32>
    %67 = vector.extract_strided_slice %66 {offsets = [0, 0], sizes = [1, 128], strides = [1, 1]} : vector<3x128xf32> to vector<1x128xf32>
    %68 = vector.broadcast %67 : vector<1x128xf32> to vector<16x128xf32>
    %69 = arith.addf %64, %68 : vector<16x128xf32>
    %cst_24 = arith.constant dense<0.000000e+00> : vector<16xf32>
    %70 = vector.multi_reduction <add>, %69, %cst_24 [1] : vector<16x128xf32> to vector<16xf32>
    %71 = vector.shape_cast %70 : vector<16xf32> to vector<16x1xf32>
    %cst_25 = arith.constant 3.125000e-02 : f32
    %72 = vector.broadcast %cst_25 : f32 to vector<16x1xf32>
    %73 = arith.mulf %71, %72 : vector<16x1xf32>
    %74 = vector.broadcast %73 : vector<16x1xf32> to vector<16x128xf32>
    %75 = arith.subf %69, %74 : vector<16x128xf32>
    %76 = arith.mulf %75, %75 : vector<16x128xf32>
    %77 = vector.broadcast %4 : vector<1x128xf32> to vector<16x128xf32>
    %78 = arith.mulf %76, %77 : vector<16x128xf32>
    %cst_26 = arith.constant dense<0.000000e+00> : vector<16xf32>
    %79 = vector.multi_reduction <add>, %78, %cst_26 [1] : vector<16x128xf32> to vector<16xf32>
    %80 = vector.shape_cast %79 : vector<16xf32> to vector<16x1xf32>
    %cst_27 = arith.constant 3.125000e-02 : f32
    %81 = vector.broadcast %cst_27 : f32 to vector<16x1xf32>
    %82 = arith.mulf %80, %81 : vector<16x1xf32>
    %cst_28 = arith.constant 9.99999974E-6 : f32
    %83 = vector.broadcast %cst_28 : f32 to vector<16x1xf32>
    %84 = arith.addf %82, %83 : vector<16x1xf32>
    %85 = math.rsqrt %84 : vector<16x1xf32>
    %86 = vector.broadcast %85 : vector<16x1xf32> to vector<16x128xf32>
    %87 = arith.mulf %75, %86 : vector<16x128xf32>
    %88 = vector.extract_strided_slice %66 {offsets = [1, 0], sizes = [1, 128], strides = [1, 1]} : vector<3x128xf32> to vector<1x128xf32>
    %89 = vector.broadcast %88 : vector<1x128xf32> to vector<16x128xf32>
    %90 = arith.mulf %87, %89 : vector<16x128xf32>
    %91 = vector.extract_strided_slice %66 {offsets = [2, 0], sizes = [1, 128], strides = [1, 1]} : vector<3x128xf32> to vector<1x128xf32>
    %92 = vector.broadcast %91 : vector<1x128xf32> to vector<16x128xf32>
    %93 = arith.addf %90, %92 : vector<16x128xf32>
    %cst_29 = arith.constant 0.000000e+00 : f32
    %94 = vector.broadcast %cst_29 : f32 to vector<16x128xf32>
    %95 = arith.maximumf %93, %94 : vector<16x128xf32>
    %96 = arith.addf %95, %7 : vector<16x128xf32>
    %97 = vector.shape_cast %96 : vector<16x128xf32> to vector<2x8x128xf32>
    %cst_30 = arith.constant 0.000000e+00 : f32
    %98 = vector.broadcast %cst_30 : f32 to vector<2x4x128xf32>
    %99 = vector.extract_strided_slice %97 {offsets = [0, 0, 0], sizes = [2, 4, 128], strides = [1, 1, 1]} : vector<2x8x128xf32> to vector<2x4x128xf32>
    %100 = tpu.concatenate %98, %99 in 1 : vector<2x4x128xf32>, vector<2x4x128xf32> -> vector<2x8x128xf32>
    %cst_31 = arith.constant 0.000000e+00 : f32
    %101 = vector.broadcast %cst_31 : f32 to vector<2x2x128xf32>
    %102 = vector.extract_strided_slice %97 {offsets = [0, 0, 0], sizes = [2, 6, 128], strides = [1, 1, 1]} : vector<2x8x128xf32> to vector<2x6x128xf32>
    %103 = tpu.concatenate %101, %102 in 1 : vector<2x2x128xf32>, vector<2x6x128xf32> -> vector<2x8x128xf32>
    %104 = tpu.concatenate %100, %103, %97 in 2 : vector<2x8x128xf32>, vector<2x8x128xf32>, vector<2x8x128xf32> -> vector<2x8x384xf32>
    %105 = vector.shape_cast %104 : vector<2x8x384xf32> to vector<16x384xf32>
    %106 = arith.truncf %105 : vector<16x384xf32> to vector<16x384xbf16>
    %c2 = arith.constant 2 : index
    %c0_32 = arith.constant 0 : index
    %c0_33 = arith.constant 0 : index
    %107 = vector.load %arg2[%c2, %c0_32, %c0_33] : memref<4x384x128xbf16, #tpu.memory_space<vmem>>, vector<1x384x128xbf16>
    %108 = vector.shape_cast %107 : vector<1x384x128xbf16> to vector<384x128xbf16>
    %cst_34 = arith.constant dense<0.000000e+00> : vector<16x128xf32>
    %109 = tpu.matmul %106, %108, %cst_34 {dimension_numbers = #tpu.dot_dimension_numbers<[1], [0], [0], [1], [0, 0, 1, 1], [], []>} : vector<16x384xbf16>, vector<384x128xbf16>, vector<16x128xf32> -> vector<16x128xf32>
    %c2_35 = arith.constant 2 : index
    %c0_36 = arith.constant 0 : index
    %c0_37 = arith.constant 0 : index
    %110 = vector.load %arg3[%c2_35, %c0_36, %c0_37] : memref<4x3x128xf32, #tpu.memory_space<vmem>>, vector<1x3x128xf32>
    %111 = vector.shape_cast %110 : vector<1x3x128xf32> to vector<3x128xf32>
    %112 = vector.extract_strided_slice %111 {offsets = [0, 0], sizes = [1, 128], strides = [1, 1]} : vector<3x128xf32> to vector<1x128xf32>
    %113 = vector.broadcast %112 : vector<1x128xf32> to vector<16x128xf32>
    %114 = arith.addf %109, %113 : vector<16x128xf32>
    %cst_38 = arith.constant dense<0.000000e+00> : vector<16xf32>
    %115 = vector.multi_reduction <add>, %114, %cst_38 [1] : vector<16x128xf32> to vector<16xf32>
    %116 = vector.shape_cast %115 : vector<16xf32> to vector<16x1xf32>
    %cst_39 = arith.constant 3.125000e-02 : f32
    %117 = vector.broadcast %cst_39 : f32 to vector<16x1xf32>
    %118 = arith.mulf %116, %117 : vector<16x1xf32>
    %119 = vector.broadcast %118 : vector<16x1xf32> to vector<16x128xf32>
    %120 = arith.subf %114, %119 : vector<16x128xf32>
    %121 = arith.mulf %120, %120 : vector<16x128xf32>
    %122 = vector.broadcast %4 : vector<1x128xf32> to vector<16x128xf32>
    %123 = arith.mulf %121, %122 : vector<16x128xf32>
    %cst_40 = arith.constant dense<0.000000e+00> : vector<16xf32>
    %124 = vector.multi_reduction <add>, %123, %cst_40 [1] : vector<16x128xf32> to vector<16xf32>
    %125 = vector.shape_cast %124 : vector<16xf32> to vector<16x1xf32>
    %cst_41 = arith.constant 3.125000e-02 : f32
    %126 = vector.broadcast %cst_41 : f32 to vector<16x1xf32>
    %127 = arith.mulf %125, %126 : vector<16x1xf32>
    %cst_42 = arith.constant 9.99999974E-6 : f32
    %128 = vector.broadcast %cst_42 : f32 to vector<16x1xf32>
    %129 = arith.addf %127, %128 : vector<16x1xf32>
    %130 = math.rsqrt %129 : vector<16x1xf32>
    %131 = vector.broadcast %130 : vector<16x1xf32> to vector<16x128xf32>
    %132 = arith.mulf %120, %131 : vector<16x128xf32>
    %133 = vector.extract_strided_slice %111 {offsets = [1, 0], sizes = [1, 128], strides = [1, 1]} : vector<3x128xf32> to vector<1x128xf32>
    %134 = vector.broadcast %133 : vector<1x128xf32> to vector<16x128xf32>
    %135 = arith.mulf %132, %134 : vector<16x128xf32>
    %136 = vector.extract_strided_slice %111 {offsets = [2, 0], sizes = [1, 128], strides = [1, 1]} : vector<3x128xf32> to vector<1x128xf32>
    %137 = vector.broadcast %136 : vector<1x128xf32> to vector<16x128xf32>
    %138 = arith.addf %135, %137 : vector<16x128xf32>
    %cst_43 = arith.constant 0.000000e+00 : f32
    %139 = vector.broadcast %cst_43 : f32 to vector<16x128xf32>
    %140 = arith.maximumf %138, %139 : vector<16x128xf32>
    %141 = vector.shape_cast %140 : vector<16x128xf32> to vector<2x8x128xf32>
    %cst_44 = arith.constant 0.000000e+00 : f32
    %142 = vector.broadcast %cst_44 : f32 to vector<2x8x128xf32>
    %cst_45 = arith.constant 0.000000e+00 : f32
    %143 = vector.broadcast %cst_45 : f32 to vector<2x4x128xf32>
    %144 = vector.extract_strided_slice %141 {offsets = [0, 0, 0], sizes = [2, 4, 128], strides = [1, 1, 1]} : vector<2x8x128xf32> to vector<2x4x128xf32>
    %145 = tpu.concatenate %143, %144 in 1 : vector<2x4x128xf32>, vector<2x4x128xf32> -> vector<2x8x128xf32>
    %146 = tpu.concatenate %142, %145, %141 in 2 : vector<2x8x128xf32>, vector<2x8x128xf32>, vector<2x8x128xf32> -> vector<2x8x384xf32>
    %147 = vector.shape_cast %146 : vector<2x8x384xf32> to vector<16x384xf32>
    %148 = arith.truncf %147 : vector<16x384xf32> to vector<16x384xbf16>
    %c3 = arith.constant 3 : index
    %c0_46 = arith.constant 0 : index
    %c0_47 = arith.constant 0 : index
    %149 = vector.load %arg2[%c3, %c0_46, %c0_47] : memref<4x384x128xbf16, #tpu.memory_space<vmem>>, vector<1x384x128xbf16>
    %150 = vector.shape_cast %149 : vector<1x384x128xbf16> to vector<384x128xbf16>
    %cst_48 = arith.constant dense<0.000000e+00> : vector<16x128xf32>
    %151 = tpu.matmul %148, %150, %cst_48 {dimension_numbers = #tpu.dot_dimension_numbers<[1], [0], [0], [1], [0, 0, 1, 1], [], []>} : vector<16x384xbf16>, vector<384x128xbf16>, vector<16x128xf32> -> vector<16x128xf32>
    %c3_49 = arith.constant 3 : index
    %c0_50 = arith.constant 0 : index
    %c0_51 = arith.constant 0 : index
    %152 = vector.load %arg3[%c3_49, %c0_50, %c0_51] : memref<4x3x128xf32, #tpu.memory_space<vmem>>, vector<1x3x128xf32>
    %153 = vector.shape_cast %152 : vector<1x3x128xf32> to vector<3x128xf32>
    %154 = vector.extract_strided_slice %153 {offsets = [0, 0], sizes = [1, 128], strides = [1, 1]} : vector<3x128xf32> to vector<1x128xf32>
    %155 = vector.broadcast %154 : vector<1x128xf32> to vector<16x128xf32>
    %156 = arith.addf %151, %155 : vector<16x128xf32>
    %cst_52 = arith.constant dense<0.000000e+00> : vector<16xf32>
    %157 = vector.multi_reduction <add>, %156, %cst_52 [1] : vector<16x128xf32> to vector<16xf32>
    %158 = vector.shape_cast %157 : vector<16xf32> to vector<16x1xf32>
    %cst_53 = arith.constant 3.125000e-02 : f32
    %159 = vector.broadcast %cst_53 : f32 to vector<16x1xf32>
    %160 = arith.mulf %158, %159 : vector<16x1xf32>
    %161 = vector.broadcast %160 : vector<16x1xf32> to vector<16x128xf32>
    %162 = arith.subf %156, %161 : vector<16x128xf32>
    %163 = arith.mulf %162, %162 : vector<16x128xf32>
    %164 = vector.broadcast %4 : vector<1x128xf32> to vector<16x128xf32>
    %165 = arith.mulf %163, %164 : vector<16x128xf32>
    %cst_54 = arith.constant dense<0.000000e+00> : vector<16xf32>
    %166 = vector.multi_reduction <add>, %165, %cst_54 [1] : vector<16x128xf32> to vector<16xf32>
    %167 = vector.shape_cast %166 : vector<16xf32> to vector<16x1xf32>
    %cst_55 = arith.constant 3.125000e-02 : f32
    %168 = vector.broadcast %cst_55 : f32 to vector<16x1xf32>
    %169 = arith.mulf %167, %168 : vector<16x1xf32>
    %cst_56 = arith.constant 9.99999974E-6 : f32
    %170 = vector.broadcast %cst_56 : f32 to vector<16x1xf32>
    %171 = arith.addf %169, %170 : vector<16x1xf32>
    %172 = math.rsqrt %171 : vector<16x1xf32>
    %173 = vector.broadcast %172 : vector<16x1xf32> to vector<16x128xf32>
    %174 = arith.mulf %162, %173 : vector<16x128xf32>
    %175 = vector.extract_strided_slice %153 {offsets = [1, 0], sizes = [1, 128], strides = [1, 1]} : vector<3x128xf32> to vector<1x128xf32>
    %176 = vector.broadcast %175 : vector<1x128xf32> to vector<16x128xf32>
    %177 = arith.mulf %174, %176 : vector<16x128xf32>
    %178 = vector.extract_strided_slice %153 {offsets = [2, 0], sizes = [1, 128], strides = [1, 1]} : vector<3x128xf32> to vector<1x128xf32>
    %179 = vector.broadcast %178 : vector<1x128xf32> to vector<16x128xf32>
    %180 = arith.addf %177, %179 : vector<16x128xf32>
    %cst_57 = arith.constant 0.000000e+00 : f32
    %181 = vector.broadcast %cst_57 : f32 to vector<16x128xf32>
    %182 = arith.maximumf %180, %181 : vector<16x128xf32>
    %183 = arith.addf %182, %96 : vector<16x128xf32>
    %184 = vector.shape_cast %183 : vector<16x128xf32> to vector<2x8x128xf32>
    %185 = arith.truncf %184 : vector<2x8x128xf32> to vector<2x8x128xbf16>
    %c0_58 = arith.constant 0 : index
    %c0_59 = arith.constant 0 : index
    %c0_60 = arith.constant 0 : index
    %186 = vector.load %arg4[%c0_58, %c0_59, %c0_60] : memref<2x8x128xbf16, #tpu.memory_space<vmem>>, vector<2x8x128xbf16>
    tpu.vector_store %arg4[%c0_58, %c0_59, %c0_60], %185 {strides = array<i32>} : memref<2x8x128xbf16, #tpu.memory_space<vmem>>, vector<2x8x128xbf16>,
    return
  }
  func.func @transform_0(%arg0: i32) -> (i32, i32, i32) {
    %c0_i32 = arith.constant 0 : i32
    %c0_i32_0 = arith.constant 0 : i32
    %c0_i32_1 = arith.constant 0 : i32
    return %arg0, %c0_i32, %c0_i32_0 : i32, i32, i32
  }
  func.func @transform_1(%arg0: i32) -> (i32, i32, i32) {
    %c0_i32 = arith.constant 0 : i32
    %c0_i32_0 = arith.constant 0 : i32
    %c0_i32_1 = arith.constant 0 : i32
    %c0_i32_2 = arith.constant 0 : i32
    return %c0_i32, %c0_i32_0, %c0_i32_1 : i32, i32, i32
  }
  func.func @transform_2(%arg0: i32) -> (i32, i32, i32) {
    %c0_i32 = arith.constant 0 : i32
    %c0_i32_0 = arith.constant 0 : i32
    %c0_i32_1 = arith.constant 0 : i32
    %c0_i32_2 = arith.constant 0 : i32
    return %c0_i32, %c0_i32_0, %c0_i32_1 : i32, i32, i32
  }
  func.func @transform_3(%arg0: i32) -> (i32, i32, i32) {
    %c0_i32 = arith.constant 0 : i32
    %c0_i32_0 = arith.constant 0 : i32
    %c0_i32_1 = arith.constant 0 : i32
    return %arg0, %c0_i32, %c0_i32_0 : i32, i32, i32
  }
}

module attributes {stable_mosaic.version = 11 : i64} {
  func.func @_logits_kernel(%arg0: i32, %arg1: memref<2x32xf32, #tpu.memory_space<vmem>>, %arg2: memref<64x32xf32, #tpu.memory_space<vmem>>, %arg3: memref<2x64xf32, #tpu.memory_space<vmem>>) attributes {dimension_semantics = [#tpu.dimension_semantics<parallel>], iteration_bounds = array<i64: 1>, scalar_prefetch = 0 : i64, scratch_operands = 0 : i64, tpu.core_type = #tpu.core_type<tc>, window_params = [{pipeline_mode = #tpu.pipeline_mode<synchronous>, transform_indices = @transform_0, window_bounds = array<i64: 2, 32>}, {transform_indices = @transform_1, window_bounds = array<i64: 64, 32>}, {transform_indices = @transform_2, window_bounds = array<i64: 2, 64>}]} {
    %c0 = arith.constant 0 : index
    %c0_0 = arith.constant 0 : index
    %0 = vector.load %arg2[%c0, %c0_0] : memref<64x32xf32, #tpu.memory_space<vmem>>, vector<64x32xf32>
    %1 = arith.mulf %0, %0 : vector<64x32xf32>
    %cst = arith.constant dense<0.000000e+00> : vector<64xf32>
    %2 = vector.multi_reduction <add>, %1, %cst [1] : vector<64x32xf32> to vector<64xf32>
    %3 = vector.shape_cast %2 : vector<64xf32> to vector<64x1xf32>
    %4 = math.sqrt %3 : vector<64x1xf32>
    %cst_1 = arith.constant 1.000000e+00 : f32
    %5 = vector.broadcast %cst_1 : f32 to vector<64x1xf32>
    %6 = arith.cmpf ogt, %4, %5 : vector<64x1xf32>
    %cst_2 = arith.constant 1.000000e-07 : f32
    %7 = vector.broadcast %cst_2 : f32 to vector<64x1xf32>
    %8 = arith.addf %4, %7 : vector<64x1xf32>
    %cst_3 = arith.constant 1.000000e+00 : f32
    %9 = vector.broadcast %cst_3 : f32 to vector<64x1xf32>
    %10 = arith.divf %9, %8 : vector<64x1xf32>
    %cst_4 = arith.constant 1.000000e+00 : f32
    %11 = vector.broadcast %cst_4 : f32 to vector<64x1xf32>
    %12 = arith.select %6, %10, %11 : vector<64x1xi1>, vector<64x1xf32>
    %13 = vector.broadcast %12 : vector<64x1xf32> to vector<64x32xf32>
    %14 = arith.mulf %0, %13 : vector<64x32xf32>
    %15 = arith.truncf %14 : vector<64x32xf32> to vector<64x32xbf16>
    %c0_5 = arith.constant 0 : index
    %c0_6 = arith.constant 0 : index
    %16 = vector.load %arg1[%c0_5, %c0_6] : memref<2x32xf32, #tpu.memory_space<vmem>>, vector<2x32xf32>
    %17 = arith.truncf %16 : vector<2x32xf32> to vector<2x32xbf16>
    %cst_7 = arith.constant dense<0.000000e+00> : vector<2x64xf32>
    %18 = tpu.matmul %17, %15, %cst_7 {dimension_numbers = #tpu.dot_dimension_numbers<[1], [1], [0], [0], [0, 0, 1, 0], [], []>} : vector<2x32xbf16>, vector<64x32xbf16>, vector<2x64xf32> -> vector<2x64xf32>
    %c0_8 = arith.constant 0 : index
    %c0_9 = arith.constant 0 : index
    %19 = vector.load %arg3[%c0_8, %c0_9] : memref<2x64xf32, #tpu.memory_space<vmem>>, vector<2x64xf32>
    tpu.vector_store %arg3[%c0_8, %c0_9], %18 {strides = array<i32>} : memref<2x64xf32, #tpu.memory_space<vmem>>, vector<2x64xf32>,
    return
  }
  func.func @transform_0(%arg0: i32) -> (i32, i32) {
    %c0_i32 = arith.constant 0 : i32
    %c0_i32_0 = arith.constant 0 : i32
    %c0_i32_1 = arith.constant 0 : i32
    return %c0_i32, %c0_i32_0 : i32, i32
  }
  func.func @transform_1(%arg0: i32) -> (i32, i32) {
    %c0_i32 = arith.constant 0 : i32
    %c0_i32_0 = arith.constant 0 : i32
    return %arg0, %c0_i32 : i32, i32
  }
  func.func @transform_2(%arg0: i32) -> (i32, i32) {
    %c0_i32 = arith.constant 0 : i32
    %c0_i32_0 = arith.constant 0 : i32
    return %c0_i32, %arg0 : i32, i32
  }
}

</mosaic_0001>

<bundles_post_ra>
// kernel: custom-call.2
= control target key start
LH: loop header
LB: loop body
LE: loop exit
PB: predicated region body
PF: predicated region fallthrough
CT: control target
= control target key end

     0   :  { %s6_s0 = inlined_call_operand.vmem [shape: bf16[2,32], index: 0, kind: output, shape index: {}]  }

// kernel: nextitnet_forward.3
= control target key start
LH: loop header
LB: loop body
LE: loop exit
PB: predicated region body
PF: predicated region fallthrough
CT: control target
= control target key end

     0   :  { %vm29_vm0 = vcmask 261120   ;;  %s450_s0 = inlined_call_operand.vmem [shape: f32[2,32], index: 0, kind: input, shape index: {}]   ;;  %s451_s1 = inlined_call_operand.vmem [shape: f32[64,32], index: 1, kind: input, shape index: {}]   ;;  %s452_s2 = inlined_call_operand.hbm [shape: f32[2,64], index: 2, kind: output, shape index: {}]  }
   0x1   :  { %v333_v0 = vld [vmem:[%s451_s1 + $0x10] sm:$0xff]  ;;  %v338_v1 = vld [vmem:[%s451_s1] sm:$0xff]  ;;  %v343_v2 = vld [vmem:[%s451_s1 + $0x18] sm:$0xff] }
   0x2   :  { %v23_v3 = vmul.f32 %v333_v0, %v333_v0  ;;  %v21_v4 = vmul.f32 %v338_v1, %v338_v1  ;;  %v24_v5 = vmul.f32 %v343_v2, %v343_v2  ;;  %v354_v6 = vld [vmem:[%s451_s1 + $0x8] sm:$0xff]  ;;  %v366_v9 = vld [vmem:[%s451_s1 + $0x20] sm:$0xff] }
   0x3   :  { %v22_v7 = vmul.f32 %v354_v6, %v354_v6  ;;  %v361_v8 = vld [vmem:[%s451_s1 + $0x28] sm:$0xff] }
   0x4   :  { %7 = vsyncpa [#allocation3], 0  ;;  %v36_v10 = vsel %vm29_vm0, %v23_v3, 0.0  ;;  %v30_v11 = vsel %vm29_vm0, %v21_v4, 0.0  ;;  %v39_v12 = vsel %vm29_vm0, %v24_v5, 0.0  ;;  %v26_v14 = vmul.f32 %v361_v8, %v361_v8  ;;  %v379_v16 = vld [vmem:[%s451_s1 + $0x38] sm:$0xff] }
   0x5   :  { %37 = vadd.xlane.f32.xlu1 %v36_v10  ;;  %31 = vadd.xlane.f32.xlu0 %v30_v11  ;;  %v33_v13 = vsel %vm29_vm0, %v22_v7, 0.0  ;;  %v25_v15 = vmul.f32 %v366_v9, %v366_v9  ;;  %v384_v17 = vld [vmem:[%s451_s1 + $0x30] sm:$0xff]  ;;  %v28_v20 = vmul.f32 %v379_v16, %v379_v16  ;;  %v312_v24 = vmov 0.0   ;;  %s314_s26 = smov [#allocation2]  }
   0x6   :  { %v45_v18 = vsel %vm29_vm0, %v26_v14, 0.0  ;;  %v27_v21 = vmul.f32 %v384_v17, %v384_v17  ;;  %241 = vmatprep.subr.bf16.mxu0 %v312_v24  ;;  %vm313_vm1 = vmmov 0   ;;  %s227_s27 = sshll.u32 %s314_s26, 4  ;;  %s228_s27 = int_to_ptr.vmem [resolvable:$true] %s227_s27 }
   0x7   :  { %v42_v19 = vsel %vm29_vm0, %v25_v15, 0.0  ;;  %v51_v22 = vsel %vm29_vm0, %v28_v20, 0.0  ;;  %249 = vmatprep.mubr.msk.bf16.mxu0 %vm313_vm1, %v312_v24  ;;  %s288_s28 = scalar_lea.vmem %s228_s27, 32  ;;  %p293_p1 = scmp.lt.s32.totalorder %s228_s27, %s228_s27 }
   0x8   :  { %v48_v23 = vsel %vm29_vm0, %v27_v21, 0.0  ;;  %p289_p0 = scmp.ne.s32.totalorder %s228_s27, %s288_s28  ;;  %p294_p2 = scmp.lt.s32.totalorder %s288_s28, %s288_s28 }
   0x9   :  { %40 = vadd.xlane.f32.xlu1 %v39_v12  ;;  %34 = vadd.xlane.f32.xlu0 %v33_v13 }
   0xa   :  { %p295_p3 = por %p294_p2, %p293_p1 }
   0xc   :  { %p296_p4 = pnand %p295_p3, %p289_p0 }
   0xd   :  { %46 = vadd.xlane.f32.xlu1 %v45_v18  ;;  %43 = vadd.xlane.f32.xlu0 %v42_v19 }
  0x11   :  { %52 = vadd.xlane.f32.xlu1 %v51_v22  ;;  %49 = vadd.xlane.f32.xlu0 %v48_v23 }
  0x92   :  { %v38_v25 = vpop.xlane.xlu1 %37  ;;  %v32_v26 = vpop.xlane.xlu0 %31 }
  0x93   :  { %256 = vrsqrt.f32 %v38_v25  ;;  %vm70_vm2 = vcmp.eq.f32.partialorder %v38_v25, inf  ;;  %v73_v34 = vand.u32 2147483648, %v38_v25  ;;  %vm56_vm3 = vcmp.eq.f32.partialorder %v32_v26, inf }
  0x94   :  { %258 = vrsqrt.f32 %v32_v26  ;;  %v59_v38 = vand.u32 2147483648, %v32_v26  ;;  %vm58_vm5 = vcmp.eq.f32.partialorder %v32_v26, 0.0  ;;  %vm72_vm6 = vcmp.eq.f32.partialorder %v38_v25, 0.0 }
  0x96   :  { %v41_v27 = vpop.xlane.xlu1 %40  ;;  %v35_v28 = vpop.xlane.xlu0 %34 }
  0x97   :  { %260 = vrsqrt.f32 %v41_v27  ;;  %vm77_vm4 = vcmp.eq.f32.partialorder %v41_v27, inf  ;;  %v80_v40 = vand.u32 2147483648, %v41_v27  ;;  %vm63_vm7 = vcmp.eq.f32.partialorder %v35_v28, inf }
  0x98   :  { %262 = vrsqrt.f32 %v35_v28  ;;  %v66_v45 = vand.u32 2147483648, %v35_v28  ;;  %vm65_vm8 = vcmp.eq.f32.partialorder %v35_v28, 0.0  ;;  %vm79_vm10 = vcmp.eq.f32.partialorder %v41_v27, 0.0 }
  0x9a   :  { %v47_v29 = vpop.xlane.xlu1 %46  ;;  %v44_v30 = vpop.xlane.xlu0 %43 }
  0x9b   :  { %264 = vrsqrt.f32 %v47_v29  ;;  %vm91_vm9 = vcmp.eq.f32.partialorder %v47_v29, inf  ;;  %v94_v49 = vand.u32 2147483648, %v47_v29  ;;  %vm84_vm11 = vcmp.eq.f32.partialorder %v44_v30, inf }
  0x9c   :  { %266 = vrsqrt.f32 %v44_v30  ;;  %v87_v53 = vand.u32 2147483648, %v44_v30  ;;  %vm93_vm12 = vcmp.eq.f32.partialorder %v47_v29, 0.0  ;;  %vm86_vm13 = vcmp.eq.f32.partialorder %v44_v30, 0.0 }
  0x9d   :  { %v257_v31 = vpop.eup %256 }
  0x9e   :  { %v259_v32 = vpop.eup %258  ;;  %v69_v33 = vmul.f32 %v257_v31, %v38_v25  ;;  %v396_v35 = vpop.xlane.xlu1 %52 }
  0x9f   :  { %v398_v36 = vpop.xlane.xlu0 %49  ;;  %v55_v37 = vmul.f32 %v259_v32, %v32_v26  ;;  %268 = vrsqrt.f32 %v396_v35  ;;  %vm105_vm14 = vcmp.eq.f32.partialorder %v396_v35, inf  ;;  %v108_v14 = vand.u32 2147483648, %v396_v35 }
  0xa0   :  { %270 = vrsqrt.f32 %v398_v36  ;;  %v71_v42 = vsel %vm70_vm2, %v38_v25, %v69_v33  ;;  %vm98_vm15 = vcmp.eq.f32.partialorder %v398_v36, inf  ;;  %vm107_vm1 = vcmp.eq.f32.partialorder %v396_v35, 0.0 }
  0xa1   :  { %v261_v39 = vpop.eup %260  ;;  %v57_v41 = vsel %vm56_vm3, %v32_v26, %v55_v37  ;;  %v74_v50 = vsel %vm72_vm6, %v73_v34, %v71_v42  ;;  %v101_v19 = vand.u32 2147483648, %v398_v36  ;;  %vm100_vm2 = vcmp.eq.f32.partialorder %v398_v36, 0.0 }
  0xa2   :  { %v263_v43 = vpop.eup %262  ;;  %v76_v44 = vmul.f32 %v261_v39, %v41_v27  ;;  %v60_v46 = vsel %vm58_vm5, %v59_v38, %v57_v41  ;;  %v120_v62 = vadd.f32 1e-07, %v74_v50  ;;  %vm112_vm6 = vcmp.gt.f32.partialorder %v74_v50, 1.0 }
  0xa3   :  { %v62_v47 = vmul.f32 %v263_v43, %v35_v28  ;;  %v118_v48 = vadd.f32 1e-07, %v60_v46  ;;  %vm110_vm3 = vcmp.gt.f32.partialorder %v60_v46, 1.0 }
  0xa4   :  { %v78_v51 = vsel %vm77_vm4, %v41_v27, %v76_v44 }
  0xa5   :  { %v265_v52 = vpop.eup %264  ;;  %v64_v54 = vsel %vm63_vm7, %v35_v28, %v62_v47  ;;  %272 = vrcp.f32 %v118_v48  ;;  %v81_v55 = vsel %vm79_vm10, %v80_v40, %v78_v51 }
  0xa6   :  { %v267_v56 = vpop.eup %266  ;;  %v90_v57 = vmul.f32 %v265_v52, %v47_v29  ;;  %v67_v58 = vsel %vm65_vm8, %v66_v45, %v64_v54  ;;  %v121_v59 = vadd.f32 1e-07, %v81_v55  ;;  %vm113_vm5 = vcmp.gt.f32.partialorder %v81_v55, 1.0  ;;  %v162_v52 = vld [vmem:[%s450_s0] sm:$0x3] }
  0xa7   :  { %v83_v60 = vmul.f32 %v267_v56, %v44_v30  ;;  %v119_v61 = vadd.f32 1e-07, %v67_v58  ;;  %vm111_vm4 = vcmp.gt.f32.partialorder %v67_v58, 1.0 }
  0xa8   :  { %274 = vrcp.f32 %v121_v59  ;;  %v92_v63 = vsel %vm91_vm9, %v47_v29, %v90_v57 }
  0xa9   :  { %v269_v3 = vpop.eup %268  ;;  %276 = vrcp.f32 %v119_v61  ;;  %v85_v4 = vsel %vm84_vm11, %v44_v30, %v83_v60  ;;  %v95_v5 = vsel %vm93_vm12, %v94_v49, %v92_v63  ;;  %vm219_vm11 = vcmask 517120  }
  0xaa   :  { %v271_v7 = vpop.eup %270  ;;  %v104_v10 = vmul.f32 %v269_v3, %v396_v35  ;;  %v88_v11 = vsel %vm86_vm13, %v87_v53, %v85_v4  ;;  %278 = vrcp.f32 %v120_v62  ;;  %v123_v13 = vadd.f32 1e-07, %v95_v5 }
  0xab   :  { %v97_v12 = vmul.f32 %v271_v7, %v398_v36  ;;  %v122_v15 = vadd.f32 1e-07, %v88_v11  ;;  %vm114_vm7 = vcmp.gt.f32.partialorder %v88_v11, 1.0  ;;  %vm115_vm8 = vcmp.gt.f32.partialorder %v95_v5, 1.0 }
  0xac   :  { %v106_v18 = vsel %vm105_vm14, %v396_v35, %v104_v10  ;;  %280 = vrcp.f32 %v123_v13  ;;  %v163_v53 = vpack.c.bf16 %v162_v52, %v162_v52 }
  0xad   :  { %v99_v21 = vsel %vm98_vm15, %v398_v36, %v97_v12  ;;  %282 = vrcp.f32 %v122_v15  ;;  %v109_v22 = vsel %vm107_vm1, %v108_v14, %v106_v18 }
  0xae   :  { %v102_v26 = vsel %vm100_vm2, %v101_v19, %v99_v21  ;;  %v125_v29 = vadd.f32 1e-07, %v109_v22  ;;  %vm117_vm10 = vcmp.gt.f32.partialorder %v109_v22, 1.0 }
  0xaf   :  { %v273_v20 = vpop.eup %272  ;;  %v124_v33 = vadd.f32 1e-07, %v102_v26  ;;  %vm116_vm9 = vcmp.gt.f32.partialorder %v102_v26, 1.0 }
  0xb0   :  { %v142_v25 = vsel %vm110_vm3, %v273_v20, 1.0  ;;  %284 = vrcp.f32 %v125_v29 }
  0xb1   :  { %v150_v31 = vmul.f32 %v142_v25, %v338_v1  ;;  %286 = vrcp.f32 %v124_v33 }
  0xb2   :  { %v275_v23 = vpop.eup %274 }
  0xb3   :  { %v277_v27 = vpop.eup %276  ;;  %v145_v34 = vsel %vm113_vm5, %v275_v23, 1.0 }
  0xb4   :  { %v143_v28 = vsel %vm111_vm4, %v277_v27, 1.0  ;;  %v279_v30 = vpop.eup %278  ;;  %v153_v38 = vmul.f32 %v145_v34, %v343_v2 }
  0xb5   :  { %v151_v32 = vmul.f32 %v143_v28, %v354_v6  ;;  %v144_v36 = vsel %vm112_vm6, %v279_v30, 1.0 }
  0xb6   :  { %v281_v39 = vpop.eup %280  ;;  %v152_v1 = vmul.f32 %v144_v36, %v333_v0 }
  0xb7   :  { %v158_v35 = vpack.c.bf16 %v151_v32, %v150_v31  ;;  %v283_v40 = vpop.eup %282  ;;  %v147_v42 = vsel %vm115_vm8, %v281_v39, 1.0 }
  0xb8   :  { %v159_v6 = vpack.c.bf16 %v153_v38, %v152_v1  ;;  %v146_v41 = vsel %vm114_vm7, %v283_v40, 1.0  ;;  %v155_v45 = vmul.f32 %v147_v42, %v361_v8 }
  0xb9   :  { %v168_v37 = vsel %vm29_vm0, %v158_v35, 0  ;;  %v154_v44 = vmul.f32 %v146_v41, %v366_v9 }
  0xba   :  { %242 = vmatpush3.bf16.xpose.msra.mxu0 %v168_v37  ;;  %v171_v43 = vsel %vm29_vm0, %v159_v6, 0  ;;  %v285_v2 = vpop.eup %284 }
  0xbb   :  { %243 = vmatprep.subr.bf16.mxu0 %v312_v24  ;;  %v287_v46 = vpop.eup %286  ;;  %v160_v47 = vpack.c.bf16 %v155_v45, %v154_v44  ;;  %v149_v48 = vsel %vm117_vm10, %v285_v2, 1.0 }
  0xbc   :  { %v148_v0 = vsel %vm116_vm9, %v287_v46, 1.0  ;;  %v157_v51 = vmul.f32 %v149_v48, %v379_v16 }
  0xbd   :  { %v174_v49 = vsel %vm29_vm0, %v160_v47, 0  ;;  %v156_v50 = vmul.f32 %v148_v0, %v384_v17 }
  0xbf   :  { %v161_v8 = vpack.c.bf16 %v157_v51, %v156_v50 }
  0xc1   :  { %v177_v9 = vsel %vm29_vm0, %v161_v8, 0 }
  0xc2   :  { %244 = vmatpush3.bf16.xpose.msra.mxu0 %v171_v43 }
  0xc3   :  { %245 = vmatprep.subr.bf16.mxu0 %v312_v24 }
  0xca   :  { %246 = vmatpush3.bf16.xpose.msra.mxu0 %v174_v49 }
  0xcb   :  { %247 = vmatprep.subr.bf16.mxu0 %v312_v24 }
  0xd2   :  { %248 = vmatpush3.bf16.xpose.msra.mxu0 %v177_v9 }
  0xd9   :  { %250 = vmatmul.mubr.msk.bf16.vlgmr.msra.gmra.mrb[0].mxu0 %vm29_vm0, %v163_v53 }
 0x1ac   :  { %v213_v17 = vpop.f32.mrb[0].mxu0 }
 0x1ad   :  { %220 = vst.msk [vmem:[#allocation2] sm:$0x3] %vm219_vm11, %v213_v17  ;;  %v251_v16 = vpop.f32.mrb[1].mxu0 }
 0x1ae   :  { %v216_v54 = vpop.f32.mrb[2].mxu0 }
 0x1af   :  { %299 = shalt.err (!%p296_p4)
}
 0x1b0   :  { %s300_s30 = scalar_lea.hbm %s452_s2, 32 }
 0x1b1   :  { %p301_p5 = scmp.ne.s32.totalorder %s452_s2, %s300_s30  ;;  %p304_p6 = scmp.lt.u32.totalorder %s300_s30, %s452_s2 }
 0x1b3   :  { %p306_p7 = pnand %p304_p6, %p301_p5 }
 0x1b5   :  { %309 = shalt.err (!%p306_p7)
}
 0x1b6   :  { %230 = dma.vmem_to_hbm [thread:$0]  %s228_s27, 32, %s452_s2, [#allocation3]   ;;  %v252_v24 = vpop.f32.mrb[3].mxu0 }
 0x1b7   :  { %310 = dma.done.wait [#allocation3], 32  }
 0x1b8   :  { %311 = vsyncadd [#allocation3], 4294967264 }
 0x1b9   :  { %234 = vsyncpa [#allocation3], 1 }

// kernel: nextitnet_forward.2
= control target key start
LH: loop header
LB: loop body
LE: loop exit
PB: predicated region body
PF: predicated region fallthrough
CT: control target
= control target key end

     0   :  { %v1981_v1 = vmov 0.0   ;;  %vm1982_vm0 = vmmov 0   ;;  %vm37_vm1 = vcmask 1040384   ;;  %vm30_vm2 = vcmask 1041408   ;;  %s2478_s1 = inlined_call_operand.vmem [shape: bf16[4,384,128], index: 1, kind: input, shape index: {}]   ;;  %s2479_s0 = inlined_call_operand.vmem [shape: bf16[2,8,128], index: 0, kind: input, shape index: {}]   ;;  %s2480_s2 = inlined_call_operand.vmem [shape: f32[4,3,128], index: 2, kind: input, shape index: {}]   ;;  %s2481_s3 = inlined_call_operand.vmem [shape: bf16[2,8,128], index: 3, kind: output, shape index: {}]  }
   0x1   :  { %v1867_v0 = vld [vmem:[%s2478_s1 + $0x40] sm:$0xff]   ;;  %1784 = vmatprep.subr.bf16.mxu1 %v1981_v1  ;;  %1800 = vmatprep.mubr.msk.bf16.mxu1 %vm1982_vm0, %v1981_v1  ;;  %v1870_v4 = vld [vmem:[%s2478_s1 + $0x48] sm:$0xff]   ;;  %v1873_v7 = vld [vmem:[%s2478_s1 + $0x50] sm:$0xff]   ;;  %v15_v36 = vlaneseq  ;;  %vm366_vm8 = vcmask 1043456  }
   0x2   :  { %v1868_v2 = vld [vmem:[%s2478_s1] sm:$0xff]   ;;  %1660 = vmatprep.subr.bf16.mxu0 %v1867_v0  ;;  %v1871_v5 = vld [vmem:[%s2478_s1 + $0x8] sm:$0xff]   ;;  %v1874_v8 = vld [vmem:[%s2478_s1 + $0x10] sm:$0xff]  }
   0x3   :  { %v1869_v3 = vld [vmem:[%s2478_s1 + $0x80] sm:$0xff]   ;;  %1661 = vmatpush3.bf16.msra.mxu0 %v1868_v2  ;;  %v1872_v6 = vld [vmem:[%s2478_s1 + $0x88] sm:$0xff]   ;;  %v1875_v9 = vld [vmem:[%s2478_s1 + $0x90] sm:$0xff]   ;;  %v2113_v37 = vshrl.u32 %v15_v36, 7  ;;  %v16_v56 = vand.u32 127, %v15_v36 }
   0x4   :  { %1785 = vmatpush3.bf16.msra.mxu1 %v1869_v3  ;;  %1662 = vmatprep.subr.bf16.mxu0 %v1870_v4  ;;  %v1876_v10 = vld [vmem:[%s2478_s1 + $0x58] sm:$0xff]   ;;  %v1879_v13 = vld [vmem:[%s2478_s1 + $0x60] sm:$0xff]   ;;  %v1882_v16 = vld [vmem:[%s2478_s1 + $0x68] sm:$0xff]  }
   0x5   :  { %1786 = vmatprep.subr.bf16.mxu1 %v1981_v1  ;;  %v1877_v11 = vld [vmem:[%s2478_s1 + $0x18] sm:$0xff]   ;;  %v1880_v14 = vld [vmem:[%s2478_s1 + $0x20] sm:$0xff]   ;;  %v1883_v17 = vld [vmem:[%s2478_s1 + $0x28] sm:$0xff]   ;;  %v2116_v38 = vsub.s32 0, %v2113_v37  ;;  %vm17_vm7 = vcmp.lt.s32.totalorder %v16_v56, 32 }
   0x6   :  { %v1878_v12 = vld [vmem:[%s2478_s1 + $0x98] sm:$0xff]   ;;  %v1881_v15 = vld [vmem:[%s2478_s1 + $0xa0] sm:$0xff]   ;;  %v1884_v18 = vld [vmem:[%s2478_s1 + $0xa8] sm:$0xff]   ;;  %v2132_v61 = vsel %vm17_vm7, 1.0, %v1981_v1 }
   0x7   :  { %1663 = vmatpush3.bf16.msra.mxu0 %v1871_v5  ;;  %v1885_v19 = vld [vmem:[%s2478_s1 + $0x70] sm:$0xff]   ;;  %v20_v22 = vld [vmem:[%s2479_s0] sm:$0xff]   ;;  %vm2078_vm3 = vmneg %vm37_vm1 }
   0x8   :  { %1787 = vmatpush3.bf16.msra.mxu1 %v1872_v6  ;;  %1664 = vmatprep.subr.bf16.mxu0 %v1873_v7  ;;  %v1886_v20 = vld [vmem:[%s2478_s1 + $0x30] sm:$0xff]   ;;  %v1888_v24 = vld [vmem:[%s2478_s1 + $0x78] sm:$0xff]   ;;  %v2085_v25 = vunpack.c.l.bf16 %v20_v22  ;;  %v2087_v26 = vunpack.c.h.bf16 %v20_v22  ;;  %vm1403_vm4 = vmpackc.low %vm2078_vm3, %vm2078_vm3 }
   0x9   :  { %1788 = vmatprep.subr.bf16.mxu1 %v1981_v1  ;;  %v1887_v21 = vld [vmem:[%s2478_s1 + $0xb0] sm:$0xff]   ;;  %v1889_v27 = vld [vmem:[%s2478_s1 + $0x38] sm:$0xff]   ;;  %vm1406_vm5 = vmneg %vm30_vm2 }
   0xa   :  { %v33_v28 = vrot.slane %v2085_v25, 7  ;;  %v34_v29 = vrot.slane %v2087_v26, 7  ;;  %v1890_v30 = vld [vmem:[%s2478_s1 + $0xb8] sm:$0xff]   ;;  %v26_v31 = vrot.slane %v2085_v25, 6  ;;  %v27_v32 = vrot.slane %v2087_v26, 6  ;;  %vm2103_vm6 = vmpackc.low %vm1406_vm5, %vm1406_vm5  ;;  %v1892_v55 = vld [vmem:[%s2478_s1 + $0x140] sm:$0xff]  }
   0xb   :  { %1665 = vmatpush3.bf16.msra.mxu0 %v1874_v8  ;;  %v2121_v39 = vld [vmem:[%s2480_s2] sm:$0x7]  ;;  %v1895_v7 = vld [vmem:[%s2478_s1 + $0x148] sm:$0xff]   ;;  %v1911_v23 = vld [vmem:[%s2478_s1 + $0x130] sm:$0xff]  }
   0xc   :  { %1789 = vmatpush3.bf16.msra.mxu1 %v1875_v9  ;;  %1666 = vmatprep.subr.bf16.mxu0 %v1876_v10  ;;  %v1404_v34 = vpack.c.bf16 %v34_v29, %v33_v28  ;;  %v1409_v35 = vpack.c.bf16 %v27_v32, %v26_v31  ;;  %v95_v41 = vrot.slane %v2121_v39, %v2116_v38  ;;  %v1893_v5 = vld [vmem:[%s2478_s1 + $0x100] sm:$0xff]   ;;  %v1896_v8 = vld [vmem:[%s2478_s1 + $0x108] sm:$0xff]   ;;  %v1898_v10 = vld [vmem:[%s2478_s1 + $0x150] sm:$0xff]  }
   0xd   :  { %1790 = vmatprep.subr.bf16.mxu1 %v1981_v1  ;;  %v1894_v6 = vld [vmem:[%s2478_s1 + $0xc0] sm:$0xff]   ;;  %v1897_v9 = vld [vmem:[%s2478_s1 + $0xc8] sm:$0xff]   ;;  %v1914_v28 = vld [vmem:[%s2478_s1 + $0x138] sm:$0xff]  }
   0xe   :  { %1405 = vmatprep.mubr.msk.bf16.mxu0 %vm1403_vm4, %v1404_v34  ;;  %v1915_v29 = vld [vmem:[%s2478_s1 + $0xf8] sm:$0xff]   ;;  %vm1489_vm9 = vmneg %vm366_vm8 }
   0xf   :  { %1667 = vmatpush3.bf16.msra.mxu0 %v1877_v11  ;;  %v1899_v11 = vld [vmem:[%s2478_s1 + $0x110] sm:$0xff]   ;;  %vm2230_vm10 = vmpackc.low %vm1489_vm9, %vm1489_vm9 }
  0x10   :  { %1791 = vmatpush3.bf16.msra.mxu1 %v1878_v12  ;;  %1668 = vmatprep.subr.bf16.mxu0 %v1879_v13  ;;  %v1900_v12 = vld [vmem:[%s2478_s1 + $0xd0] sm:$0xff]   ;;  %v1901_v13 = vld [vmem:[%s2478_s1 + $0x158] sm:$0xff]  }
  0x11   :  { %1792 = vmatprep.subr.bf16.mxu1 %v1981_v1 }
  0x13   :  { %1669 = vmatpush3.bf16.msra.mxu0 %v1880_v14  ;;  %v1902_v14 = vld [vmem:[%s2478_s1 + $0x118] sm:$0xff]  }
  0x14   :  { %1793 = vmatpush3.bf16.msra.mxu1 %v1881_v15  ;;  %1670 = vmatprep.subr.bf16.mxu0 %v1882_v16  ;;  %v1903_v15 = vld [vmem:[%s2478_s1 + $0xd8] sm:$0xff]   ;;  %v1904_v16 = vld [vmem:[%s2478_s1 + $0x160] sm:$0xff]  }
  0x15   :  { %1794 = vmatprep.subr.bf16.mxu1 %v1981_v1 }
  0x17   :  { %1671 = vmatpush3.bf16.msra.mxu0 %v1883_v17  ;;  %v1905_v17 = vld [vmem:[%s2478_s1 + $0x120] sm:$0xff]  }
  0x18   :  { %1795 = vmatpush3.bf16.msra.mxu1 %v1884_v18  ;;  %1672 = vmatprep.subr.bf16.mxu0 %v1885_v19  ;;  %v1906_v18 = vld [vmem:[%s2478_s1 + $0xe0] sm:$0xff]   ;;  %v1907_v19 = vld [vmem:[%s2478_s1 + $0x168] sm:$0xff]  }
  0x19   :  { %1796 = vmatprep.subr.bf16.mxu1 %v1981_v1 }
  0x1b   :  { %1673 = vmatpush3.bf16.msra.mxu0 %v1886_v20  ;;  %v1908_v20 = vld [vmem:[%s2478_s1 + $0x128] sm:$0xff]  }
  0x1c   :  { %1797 = vmatpush3.bf16.msra.mxu1 %v1887_v21  ;;  %1674 = vmatprep.subr.bf16.mxu0 %v1888_v24  ;;  %v1909_v21 = vld [vmem:[%s2478_s1 + $0xe8] sm:$0xff]   ;;  %v1912_v24 = vld [vmem:[%s2478_s1 + $0xf0] sm:$0xff]  }
  0x1d   :  { %1798 = vmatprep.subr.bf16.mxu1 %v1981_v1 }
  0x1f   :  { %1675 = vmatpush3.bf16.msra.mxu0 %v1889_v27  ;;  %v1913_v27 = vld [vmem:[%s2478_s1 + $0x178] sm:$0xff]  }
  0x20   :  { %1799 = vmatpush3.bf16.msra.mxu1 %v1890_v30  ;;  %1691 = vmatprep.subr.bf16.mxu0 %v1893_v5 }
  0x21   :  { %1804 = vmatprep.subr.bf16.mxu1 %v1981_v1 }
  0x22   :  { %1410 = vmatmul.mubr.msk.bf16.vlgmr.msra.gmra.mrb[0].mxu0 %vm2103_vm6, %v1409_v35 }
  0x23   :  { %1801 = vmatmul.mubr.bf16.vlgmr.msra.gmra.mrb[0].mxu1 %v20_v22  ;;  %1692 = vmatpush3.bf16.msra.mxu0 %v1894_v6  ;;  %v1910_v22 = vld [vmem:[%s2478_s1 + $0x170] sm:$0xff]  }
  0x24   :  { %1820 = vmatprep.mubr.msk.bf16.mxu1 %vm1982_vm0, %v1981_v1  ;;  %1805 = vmatpush3.bf16.msra.mxu1 %v1892_v55 }
  0x25   :  { %1806 = vmatprep.subr.bf16.mxu1 %v1981_v1  ;;  %1693 = vmatprep.subr.bf16.mxu0 %v1896_v8 }
  0x27   :  { %1694 = vmatpush3.bf16.msra.mxu0 %v1897_v9 }
  0x28   :  { %1807 = vmatpush3.bf16.msra.mxu1 %v1895_v7  ;;  %1695 = vmatprep.subr.bf16.mxu0 %v1899_v11 }
  0x29   :  { %1808 = vmatprep.subr.bf16.mxu1 %v1981_v1 }
  0x2b   :  { %1696 = vmatpush3.bf16.msra.mxu0 %v1900_v12 }
  0x2c   :  { %1809 = vmatpush3.bf16.msra.mxu1 %v1898_v10  ;;  %1697 = vmatprep.subr.bf16.mxu0 %v1902_v14  ;;  %v1916_v14 = vld [vmem:[%s2478_s1 + $0x200] sm:$0xff]  }
  0x2d   :  { %1810 = vmatprep.subr.bf16.mxu1 %v1981_v1 }
  0x2f   :  { %1698 = vmatpush3.bf16.msra.mxu0 %v1903_v15 }
  0x30   :  { %1811 = vmatpush3.bf16.msra.mxu1 %v1901_v13  ;;  %1699 = vmatprep.subr.bf16.mxu0 %v1905_v17 }
  0x31   :  { %1812 = vmatprep.subr.bf16.mxu1 %v1981_v1 }
  0x33   :  { %1700 = vmatpush3.bf16.msra.mxu0 %v1906_v18 }
  0x34   :  { %1813 = vmatpush3.bf16.msra.mxu1 %v1904_v16  ;;  %1701 = vmatprep.subr.bf16.mxu0 %v1908_v20 }
  0x35   :  { %1814 = vmatprep.subr.bf16.mxu1 %v1981_v1 }
  0x37   :  { %1702 = vmatpush3.bf16.msra.mxu0 %v1909_v21 }
  0x38   :  { %1815 = vmatpush3.bf16.msra.mxu1 %v1907_v19  ;;  %1703 = vmatprep.subr.bf16.mxu0 %v1911_v23 }
  0x39   :  { %1816 = vmatprep.subr.bf16.mxu1 %v1981_v1 }
  0x3b   :  { %1704 = vmatpush3.bf16.msra.mxu0 %v1912_v24 }
  0x3c   :  { %1817 = vmatpush3.bf16.msra.mxu1 %v1910_v22  ;;  %1705 = vmatprep.subr.bf16.mxu0 %v1914_v28  ;;  %v1918_v28 = vld [vmem:[%s2478_s1 + $0x180] sm:$0xff]  }
  0x3d   :  { %1818 = vmatprep.subr.bf16.mxu1 %v1981_v1 }
  0x3f   :  { %1706 = vmatpush3.bf16.msra.mxu0 %v1915_v29  ;;  %v1919_v29 = vld [vmem:[%s2478_s1 + $0x208] sm:$0xff]  }
  0x40   :  { %1819 = vmatpush3.bf16.msra.mxu1 %v1913_v27  ;;  %v1917_v27 = vld [vmem:[%s2478_s1 + $0x1c0] sm:$0xff]  }
  0x41   :  { %1824 = vmatprep.subr.bf16.mxu1 %v1981_v1  ;;  %1722 = vmatprep.subr.bf16.mxu0 %v1917_v27 }
  0xf5   :  { %v1676_v40 = vpop.f32.mrb[0].mxu0 }
  0xf6   :  { %v1677_v42 = vpop.f32.mrb[1].mxu0  ;;  %v315_v43 = vpop.f32.mrb[0].mxu1 }
  0xf7   :  { %v1678_v44 = vadd.f32 %v1677_v42, %v1676_v40  ;;  %v1679_v45 = vpop.f32.mrb[2].mxu0  ;;  %v1802_v46 = vpop.f32.mrb[1].mxu1  ;;  %v2219_v40 = vsub.s32 1, %v2113_v37 }
  0xf8   :  { %v1680_v47 = vpop.f32.mrb[3].mxu0  ;;  %v318_v48 = vpop.f32.mrb[2].mxu1 }
  0xf9   :  { %v275_v49 = vadd.f32 %v1678_v44, %v95_v41  ;;  %v1681_v50 = vadd.f32 %v1680_v47, %v1679_v45  ;;  %v1803_v51 = vpop.f32.mrb[3].mxu1  ;;  %v349_v42 = vrot.slane %v2121_v39, %v2219_v40 }
  0xfb   :  { %v316_v52 = vadd.f32 %v315_v43, %v275_v49  ;;  %v278_v53 = vadd.f32 %v1681_v50, %v95_v41  ;;  %v2222_v41 = vsub.s32 2, %v2113_v37 }
  0xfd   :  { %v319_v54 = vadd.f32 %v318_v48, %v278_v53  ;;  %322 = vadd.xlane.f32.xlu0 %v316_v52  ;;  %v355_v44 = vrot.slane %v2121_v39, %v2222_v41 }
 0x101   :  { %324 = vadd.xlane.f32.xlu0 %v319_v54 }
 0x18a   :  { %v323_v57 = vpop.xlane.xlu0 %322 }
 0x18b   :  { %v326_v58 = vmul.f32 0.03125, %v323_v57 }
 0x18d   :  { %v2129_v59 = vsub.f32 %v316_v52, %v326_v58 }
 0x18e   :  { %v325_v60 = vpop.xlane.xlu0 %324 }
 0x18f   :  { %v327_v62 = vmul.f32 0.03125, %v325_v60  ;;  %v330_v63 = vmul.f32 %v2129_v59, %v2129_v59 }
 0x191   :  { %v2136_v0 = vsub.f32 %v319_v54, %v327_v62  ;;  %v332_v2 = vmul.f32 %v2132_v61, %v330_v63  ;;  %v2243_v62 = vld [vmem:[%s2480_s2 + $0x4] sm:$0x7] }
 0x193   :  { %334 = vadd.xlane.f32.xlu1 %v332_v2  ;;  %v331_v3 = vmul.f32 %v2136_v0, %v2136_v0 }
 0x195   :  { %v333_v4 = vmul.f32 %v2132_v61, %v331_v3 }
 0x197   :  { %336 = vadd.xlane.f32.xlu1 %v333_v4  ;;  %v432_v4 = vrot.slane %v2243_v62, %v2116_v38 }
 0x220   :  { %v335_v30 = vpop.xlane.xlu1 %334 }
 0x221   :  { %v338_v31 = vmul.f32 0.03125, %v335_v30  ;;  %v1920_v30 = vld [vmem:[%s2478_s1 + $0x1c8] sm:$0xff]  }
 0x223   :  { %v340_v32 = vadd.f32 1e-05, %v338_v31  ;;  %v1921_v31 = vld [vmem:[%s2478_s1 + $0x188] sm:$0xff]  }
 0x224   :  { %v337_v34 = vpop.xlane.xlu1 %336 }
 0x225   :  { %1965 = vrsqrt.f32 %v340_v32  ;;  %v339_v35 = vmul.f32 0.03125, %v337_v34  ;;  %v1922_v32 = vld [vmem:[%s2478_s1 + $0x210] sm:$0xff]  }
 0x226   :  { %v1923_v34 = vld [vmem:[%s2478_s1 + $0x1d0] sm:$0xff]  }
 0x227   :  { %v341_v36 = vadd.f32 1e-05, %v339_v35  ;;  %v1924_v35 = vld [vmem:[%s2478_s1 + $0x190] sm:$0xff]  }
 0x229   :  { %1967 = vrsqrt.f32 %v341_v36  ;;  %v1925_v36 = vld [vmem:[%s2478_s1 + $0x218] sm:$0xff]  }
 0x22f   :  { %v1966_v43 = vpop.eup %1965 }
 0x230   :  { %v344_v45 = vmul.f32 %v1966_v43, %v2129_v59  ;;  %v1927_v43 = vld [vmem:[%s2478_s1 + $0x198] sm:$0xff]  }
 0x232   :  { %v350_v46 = vmul.f32 %v349_v42, %v344_v45  ;;  %v1929_v45 = vld [vmem:[%s2478_s1 + $0x1e0] sm:$0xff]  }
 0x233   :  { %v1968_v47 = vpop.eup %1967 }
 0x234   :  { %v345_v48 = vmul.f32 %v1968_v47, %v2136_v0  ;;  %v356_v49 = vadd.f32 %v355_v44, %v350_v46  ;;  %v1930_v46 = vld [vmem:[%s2478_s1 + $0x1a0] sm:$0xff]   ;;  %v1931_v47 = vld [vmem:[%s2478_s1 + $0x228] sm:$0xff]  }
 0x236   :  { %v351_v50 = vmul.f32 %v349_v42, %v345_v48  ;;  %v358_v51 = vmax.f32 %v356_v49, 0.0  ;;  %v1926_v42 = vld [vmem:[%s2478_s1 + $0x1d8] sm:$0xff]   ;;  %v1932_v48 = vld [vmem:[%s2478_s1 + $0x1e8] sm:$0xff]  }
 0x237   :  { %v1933_v49 = vld [vmem:[%s2478_s1 + $0x1a8] sm:$0xff]  }
 0x238   :  { %v357_v52 = vadd.f32 %v355_v44, %v351_v50  ;;  %v369_v53 = vrot.slane %v358_v51, 6  ;;  %v362_v56 = vrot.slane %v358_v51, 4  ;;  %v1928_v44 = vld [vmem:[%s2478_s1 + $0x220] sm:$0xff]   ;;  %v1934_v50 = vld [vmem:[%s2478_s1 + $0x230] sm:$0xff]  }
 0x23a   :  { %v359_v37 = vmax.f32 %v357_v52, 0.0  ;;  %v1936_v52 = vld [vmem:[%s2478_s1 + $0x1b0] sm:$0xff]  }
 0x23c   :  { %v377_v54 = vpack.c.bf16 %v359_v37, %v358_v51  ;;  %v370_v55 = vrot.slane %v359_v37, 6  ;;  %v363_v57 = vrot.slane %v359_v37, 4  ;;  %v1935_v51 = vld [vmem:[%s2478_s1 + $0x1f0] sm:$0xff]   ;;  %v1937_v37 = vld [vmem:[%s2478_s1 + $0x238] sm:$0xff]  }
 0x23e   :  { %1821 = vmatmul.mubr.bf16.vlgmr.msra.gmra.mrb[4].mxu1 %v377_v54  ;;  %v1487_v39 = vpack.c.bf16 %v370_v55, %v369_v53  ;;  %v1492_v59 = vpack.c.bf16 %v363_v57, %v362_v56  ;;  %v1938_v53 = vld [vmem:[%s2478_s1 + $0x1f8] sm:$0xff]  }
 0x23f   :  { %1840 = vmatprep.mubr.msk.bf16.mxu1 %vm1982_vm0, %v1981_v1  ;;  %1825 = vmatpush3.bf16.msra.mxu1 %v1916_v14  ;;  %v1939_v54 = vld [vmem:[%s2478_s1 + $0x1b8] sm:$0xff]  }
 0x240   :  { %1488 = vmatprep.mubr.msk.bf16.mxu0 %vm2103_vm6, %v1487_v39  ;;  %1826 = vmatprep.subr.bf16.mxu1 %v1981_v1 }
 0x241   :  { %1493 = vmatmul.mubr.msk.bf16.vlgmr.msra.gmra.mrb[4].mxu0 %vm2230_vm10, %v1492_v59 }
 0x242   :  { %1723 = vmatpush3.bf16.msra.mxu0 %v1918_v28 }
 0x243   :  { %1827 = vmatpush3.bf16.msra.mxu1 %v1919_v29  ;;  %1724 = vmatprep.subr.bf16.mxu0 %v1920_v30 }
 0x244   :  { %1828 = vmatprep.subr.bf16.mxu1 %v1981_v1 }
 0x246   :  { %1725 = vmatpush3.bf16.msra.mxu0 %v1921_v31 }
 0x247   :  { %1829 = vmatpush3.bf16.msra.mxu1 %v1922_v32  ;;  %1726 = vmatprep.subr.bf16.mxu0 %v1923_v34 }
 0x248   :  { %1830 = vmatprep.subr.bf16.mxu1 %v1981_v1 }
 0x24a   :  { %1727 = vmatpush3.bf16.msra.mxu0 %v1924_v35 }
 0x24b   :  { %1831 = vmatpush3.bf16.msra.mxu1 %v1925_v36  ;;  %1728 = vmatprep.subr.bf16.mxu0 %v1926_v42  ;;  %v1940_v36 = vld [vmem:[%s2478_s1 + $0x2c0] sm:$0xff]  }
 0x24c   :  { %1832 = vmatprep.subr.bf16.mxu1 %v1981_v1  ;;  %v1941_v42 = vld [vmem:[%s2478_s1 + $0x280] sm:$0xff]  }
 0x24e   :  { %1729 = vmatpush3.bf16.msra.mxu0 %v1927_v43  ;;  %v1942_v43 = vld [vmem:[%s2478_s1 + $0x240] sm:$0xff]  }
 0x24f   :  { %1833 = vmatpush3.bf16.msra.mxu1 %v1928_v44  ;;  %1730 = vmatprep.subr.bf16.mxu0 %v1929_v45 }
 0x250   :  { %1834 = vmatprep.subr.bf16.mxu1 %v1981_v1 }
 0x252   :  { %1731 = vmatpush3.bf16.msra.mxu0 %v1930_v46 }
 0x253   :  { %1835 = vmatpush3.bf16.msra.mxu1 %v1931_v47  ;;  %1732 = vmatprep.subr.bf16.mxu0 %v1932_v48 }
 0x254   :  { %1836 = vmatprep.subr.bf16.mxu1 %v1981_v1 }
 0x256   :  { %1733 = vmatpush3.bf16.msra.mxu0 %v1933_v49 }
 0x257   :  { %1837 = vmatpush3.bf16.msra.mxu1 %v1934_v50  ;;  %1734 = vmatprep.subr.bf16.mxu0 %v1935_v51 }
 0x258   :  { %1838 = vmatprep.subr.bf16.mxu1 %v1981_v1 }
 0x25a   :  { %1735 = vmatpush3.bf16.msra.mxu0 %v1936_v52 }
 0x25b   :  { %1839 = vmatpush3.bf16.msra.mxu1 %v1937_v37  ;;  %1736 = vmatprep.subr.bf16.mxu0 %v1938_v53  ;;  %v1943_v53 = vld [vmem:[%s2478_s1 + $0x2c8] sm:$0xff]  }
 0x25c   :  { %1844 = vmatprep.subr.bf16.mxu1 %v1981_v1 }
 0x25e   :  { %1737 = vmatpush3.bf16.msra.mxu0 %v1939_v54  ;;  %v1944_v54 = vld [vmem:[%s2478_s1 + $0x288] sm:$0xff]  }
 0x25f   :  { %1753 = vmatprep.subr.bf16.mxu0 %v1941_v42  ;;  %v1625_v42 = vld [vmem:[%s2480_s2 + $0xc] sm:$0x7] }
 0x311   :  { %v652_v60 = vpop.f32.mrb[4].mxu1 }
 0x312   :  { %v1822_v63 = vpop.f32.mrb[5].mxu1 }
 0x313   :  { %v655_v0 = vpop.f32.mrb[6].mxu1  ;;  %v686_v63 = vrot.slane %v2243_v62, %v2219_v40 }
 0x314   :  { %v1707_v2 = vpop.f32.mrb[4].mxu0  ;;  %v1823_v3 = vpop.f32.mrb[7].mxu1 }
 0x315   :  { %v1708_v5 = vpop.f32.mrb[5].mxu0 }
 0x316   :  { %v1709_v6 = vadd.f32 %v1708_v5, %v1707_v2  ;;  %v1710_v7 = vpop.f32.mrb[6].mxu0  ;;  %v692_v2 = vrot.slane %v2243_v62, %v2222_v41 }
 0x317   :  { %v1711_v8 = vpop.f32.mrb[7].mxu0 }
 0x318   :  { %v612_v9 = vadd.f32 %v1709_v6, %v432_v4  ;;  %v1712_v10 = vadd.f32 %v1711_v8, %v1710_v7 }
 0x31a   :  { %v615_v11 = vadd.f32 %v1712_v10, %v432_v4  ;;  %v653_v12 = vadd.f32 %v652_v60, %v612_v9 }
 0x31c   :  { %659 = vadd.xlane.f32.xlu0 %v653_v12  ;;  %v656_v13 = vadd.f32 %v655_v0, %v615_v11 }
 0x31e   :  { %661 = vadd.xlane.f32.xlu1 %v656_v13 }
 0x3a9   :  { %v660_v15 = vpop.xlane.xlu0 %659 }
 0x3aa   :  { %v663_v16 = vmul.f32 0.03125, %v660_v15 }
 0x3ab   :  { %v662_v17 = vpop.xlane.xlu1 %661 }
 0x3ac   :  { %v2251_v18 = vsub.f32 %v653_v12, %v663_v16  ;;  %v664_v19 = vmul.f32 0.03125, %v662_v17 }
 0x3ae   :  { %v2253_v20 = vsub.f32 %v656_v13, %v664_v19  ;;  %v667_v21 = vmul.f32 %v2251_v18, %v2251_v18 }
 0x3b0   :  { %v669_v22 = vmul.f32 %v2132_v61, %v667_v21  ;;  %v668_v23 = vmul.f32 %v2253_v20, %v2253_v20 }
 0x3b2   :  { %671 = vadd.xlane.f32.xlu0 %v669_v22  ;;  %v670_v24 = vmul.f32 %v2132_v61, %v668_v23 }
 0x3b4   :  { %673 = vadd.xlane.f32.xlu1 %v670_v24 }
 0x43f   :  { %v672_v55 = vpop.xlane.xlu0 %671 }
 0x440   :  { %v675_v56 = vmul.f32 0.03125, %v672_v55  ;;  %v1945_v55 = vld [vmem:[%s2478_s1 + $0x248] sm:$0xff]  }
 0x441   :  { %v674_v57 = vpop.xlane.xlu1 %673 }
 0x442   :  { %v677_v39 = vadd.f32 1e-05, %v675_v56  ;;  %v676_v59 = vmul.f32 0.03125, %v674_v57  ;;  %v1946_v56 = vld [vmem:[%s2478_s1 + $0x2d0] sm:$0xff]  }
 0x443   :  { %v1947_v57 = vld [vmem:[%s2478_s1 + $0x290] sm:$0xff]  }
 0x444   :  { %1969 = vrsqrt.f32 %v677_v39  ;;  %v678_v60 = vadd.f32 1e-05, %v676_v59  ;;  %v1948_v39 = vld [vmem:[%s2478_s1 + $0x250] sm:$0xff]   ;;  %v1949_v59 = vld [vmem:[%s2478_s1 + $0x2d8] sm:$0xff]  }
 0x446   :  { %1971 = vrsqrt.f32 %v678_v60  ;;  %v1950_v60 = vld [vmem:[%s2478_s1 + $0x298] sm:$0xff]  }
 0x44e   :  { %v1970_v0 = vpop.eup %1969 }
 0x44f   :  { %v681_v3 = vmul.f32 %v1970_v0, %v2251_v18  ;;  %v1952_v0 = vld [vmem:[%s2478_s1 + $0x2e0] sm:$0xff]  }
 0x450   :  { %v1972_v4 = vpop.eup %1971 }
 0x451   :  { %v687_v5 = vmul.f32 %v686_v63, %v681_v3  ;;  %v682_v6 = vmul.f32 %v1972_v4, %v2253_v20  ;;  %v1954_v3 = vld [vmem:[%s2478_s1 + $0x260] sm:$0xff]   ;;  %v1955_v4 = vld [vmem:[%s2478_s1 + $0x2e8] sm:$0xff]  }
 0x453   :  { %v693_v7 = vadd.f32 %v692_v2, %v687_v5  ;;  %v688_v8 = vmul.f32 %v686_v63, %v682_v6  ;;  %v1951_v63 = vld [vmem:[%s2478_s1 + $0x258] sm:$0xff]   ;;  %v1956_v5 = vld [vmem:[%s2478_s1 + $0x2a8] sm:$0xff]  }
 0x454   :  { %v1957_v6 = vld [vmem:[%s2478_s1 + $0x268] sm:$0xff]  }
 0x455   :  { %v695_v9 = vmax.f32 %v693_v7, 0.0  ;;  %v694_v10 = vadd.f32 %v692_v2, %v688_v8  ;;  %v1953_v2 = vld [vmem:[%s2478_s1 + $0x2a0] sm:$0xff]   ;;  %v1958_v7 = vld [vmem:[%s2478_s1 + $0x2f0] sm:$0xff]  }
 0x456   :  { %v1959_v8 = vld [vmem:[%s2478_s1 + $0x2b0] sm:$0xff]  }
 0x457   :  { %v696_v11 = vmax.f32 %v694_v10, 0.0  ;;  %v2344_v12 = vadd.f32 %v695_v9, %v2085_v25  ;;  %v1960_v9 = vld [vmem:[%s2478_s1 + $0x270] sm:$0xff]   ;;  %v1961_v10 = vld [vmem:[%s2478_s1 + $0x2f8] sm:$0xff]  }
 0x459   :  { %v2347_v13 = vadd.f32 %v696_v11, %v2087_v26  ;;  %v707_v14 = vrot.slane %v2344_v12, 6  ;;  %v701_v16 = vrot.slane %v2344_v12, 4  ;;  %v2364_v26 = vld [vmem:[%s2480_s2 + $0x8] sm:$0x7]  ;;  %v1962_v11 = vld [vmem:[%s2478_s1 + $0x2b8] sm:$0xff]  }
 0x45a   :  { %v770_v24 = vrot.slane %v2364_v26, %v2116_v38 }
 0x45b   :  { %v715_v62 = vpack.c.bf16 %v2347_v13, %v2344_v12  ;;  %v708_v15 = vrot.slane %v2347_v13, 6  ;;  %v702_v17 = vrot.slane %v2347_v13, 4 }
 0x45d   :  { %1841 = vmatmul.mubr.bf16.vlgmr.msra.gmra.mrb[8].mxu1 %v715_v62  ;;  %v1570_v18 = vpack.c.bf16 %v708_v15, %v707_v14  ;;  %v1575_v19 = vpack.c.bf16 %v702_v17, %v701_v16  ;;  %v1963_v14 = vld [vmem:[%s2478_s1 + $0x278] sm:$0xff]  }
 0x45e   :  { %1860 = vmatprep.mubr.msk.bf16.mxu1 %vm1982_vm0, %v1981_v1  ;;  %1845 = vmatpush3.bf16.msra.mxu1 %v1940_v36 }
 0x45f   :  { %1571 = vmatprep.mubr.msk.bf16.mxu0 %vm2103_vm6, %v1570_v18  ;;  %1846 = vmatprep.subr.bf16.mxu1 %v1981_v1 }
 0x460   :  { %1576 = vmatmul.mubr.msk.bf16.vlgmr.msra.gmra.mrb[8].mxu0 %vm2230_vm10, %v1575_v19 }
 0x461   :  { %1754 = vmatpush3.bf16.msra.mxu0 %v1942_v43 }
 0x462   :  { %1847 = vmatpush3.bf16.msra.mxu1 %v1943_v53  ;;  %1755 = vmatprep.subr.bf16.mxu0 %v1944_v54 }
 0x463   :  { %1848 = vmatprep.subr.bf16.mxu1 %v1981_v1 }
 0x465   :  { %1756 = vmatpush3.bf16.msra.mxu0 %v1945_v55 }
 0x466   :  { %1849 = vmatpush3.bf16.msra.mxu1 %v1946_v56  ;;  %1757 = vmatprep.subr.bf16.mxu0 %v1947_v57 }
 0x467   :  { %1850 = vmatprep.subr.bf16.mxu1 %v1981_v1 }
 0x469   :  { %1758 = vmatpush3.bf16.msra.mxu0 %v1948_v39 }
 0x46a   :  { %1851 = vmatpush3.bf16.msra.mxu1 %v1949_v59  ;;  %1759 = vmatprep.subr.bf16.mxu0 %v1950_v60 }
 0x46b   :  { %1852 = vmatprep.subr.bf16.mxu1 %v1981_v1 }
 0x46d   :  { %1760 = vmatpush3.bf16.msra.mxu0 %v1951_v63 }
 0x46e   :  { %1853 = vmatpush3.bf16.msra.mxu1 %v1952_v0  ;;  %1761 = vmatprep.subr.bf16.mxu0 %v1953_v2 }
 0x46f   :  { %1854 = vmatprep.subr.bf16.mxu1 %v1981_v1 }
 0x471   :  { %1762 = vmatpush3.bf16.msra.mxu0 %v1954_v3 }
 0x472   :  { %1855 = vmatpush3.bf16.msra.mxu1 %v1955_v4  ;;  %1763 = vmatprep.subr.bf16.mxu0 %v1956_v5 }
 0x473   :  { %1856 = vmatprep.subr.bf16.mxu1 %v1981_v1 }
 0x475   :  { %1764 = vmatpush3.bf16.msra.mxu0 %v1957_v6 }
 0x476   :  { %1857 = vmatpush3.bf16.msra.mxu1 %v1958_v7  ;;  %1765 = vmatprep.subr.bf16.mxu0 %v1959_v8 }
 0x477   :  { %1858 = vmatprep.subr.bf16.mxu1 %v1981_v1 }
 0x479   :  { %1766 = vmatpush3.bf16.msra.mxu0 %v1960_v9  ;;  %v1354_v9 = vrot.slane %v1625_v42, %v2219_v40 }
 0x47a   :  { %1859 = vmatpush3.bf16.msra.mxu1 %v1961_v10  ;;  %1767 = vmatprep.subr.bf16.mxu0 %v1962_v11  ;;  %v1360_v11 = vrot.slane %v1625_v42, %v2222_v41 }
 0x47d   :  { %1768 = vmatpush3.bf16.msra.mxu0 %v1963_v14 }
 0x530   :  { %v990_v25 = vpop.f32.mrb[8].mxu1 }
 0x531   :  { %v1842_v20 = vpop.f32.mrb[9].mxu1 }
 0x532   :  { %v993_v21 = vpop.f32.mrb[10].mxu1  ;;  %v1030_v20 = vrot.slane %v2364_v26, %v2222_v41 }
 0x533   :  { %v1738_v22 = vpop.f32.mrb[8].mxu0  ;;  %v1843_v23 = vpop.f32.mrb[11].mxu1 }
 0x534   :  { %v1739_v27 = vpop.f32.mrb[9].mxu0 }
 0x535   :  { %v1740_v28 = vadd.f32 %v1739_v27, %v1738_v22  ;;  %v1741_v33 = vpop.f32.mrb[10].mxu0 }
 0x536   :  { %v1742_v29 = vpop.f32.mrb[11].mxu0 }
 0x537   :  { %v950_v30 = vadd.f32 %v1740_v28, %v770_v24  ;;  %v1743_v31 = vadd.f32 %v1742_v29, %v1741_v33 }
 0x539   :  { %v953_v32 = vadd.f32 %v1743_v31, %v770_v24  ;;  %v991_v34 = vadd.f32 %v990_v25, %v950_v30  ;;  %v1024_v25 = vrot.slane %v2364_v26, %v2219_v40  ;;  %v1983_v26 = vmov 0.0|0.0  }
 0x53b   :  { %997 = vadd.xlane.f32.xlu0 %v991_v34  ;;  %v994_v35 = vadd.f32 %v993_v21, %v953_v32 }
 0x53d   :  { %999 = vadd.xlane.f32.xlu1 %v994_v35 }
 0x5c8   :  { %v998_v44 = vpop.xlane.xlu0 %997 }
 0x5c9   :  { %v1001_v45 = vmul.f32 0.03125, %v998_v44 }
 0x5ca   :  { %v1000_v46 = vpop.xlane.xlu1 %999 }
 0x5cb   :  { %v2378_v47 = vsub.f32 %v991_v34, %v1001_v45  ;;  %v1002_v48 = vmul.f32 0.03125, %v1000_v46 }
 0x5cd   :  { %v2380_v49 = vsub.f32 %v994_v35, %v1002_v48  ;;  %v1005_v50 = vmul.f32 %v2378_v47, %v2378_v47 }
 0x5cf   :  { %v1007_v51 = vmul.f32 %v2132_v61, %v1005_v50  ;;  %v1006_v52 = vmul.f32 %v2380_v49, %v2380_v49 }
 0x5d1   :  { %1009 = vadd.xlane.f32.xlu0 %v1007_v51  ;;  %v1008_v37 = vmul.f32 %v2132_v61, %v1006_v52 }
 0x5d3   :  { %1011 = vadd.xlane.f32.xlu1 %v1008_v37 }
 0x65e   :  { %v1010_v62 = vpop.xlane.xlu0 %1009 }
 0x65f   :  { %v1013_v15 = vmul.f32 0.03125, %v1010_v62 }
 0x660   :  { %v1012_v16 = vpop.xlane.xlu1 %1011 }
 0x661   :  { %v1015_v17 = vadd.f32 1e-05, %v1013_v15  ;;  %v1014_v18 = vmul.f32 0.03125, %v1012_v16 }
 0x663   :  { %1973 = vrsqrt.f32 %v1015_v17  ;;  %v1016_v19 = vadd.f32 1e-05, %v1014_v18 }
 0x665   :  { %1975 = vrsqrt.f32 %v1016_v19 }
 0x66d   :  { %v1974_v1 = vpop.eup %1973 }
 0x66e   :  { %v1019_v21 = vmul.f32 %v1974_v1, %v2378_v47  ;;  %v1100_v47 = vrot.slane %v1625_v42, %v2116_v38 }
 0x66f   :  { %v1976_v22 = vpop.eup %1975 }
 0x670   :  { %v1020_v23 = vmul.f32 %v1976_v22, %v2380_v49  ;;  %v1025_v24 = vmul.f32 %v1024_v25, %v1019_v21 }
 0x672   :  { %v1026_v27 = vmul.f32 %v1024_v25, %v1020_v23  ;;  %v1031_v28 = vadd.f32 %v1030_v20, %v1025_v24 }
 0x674   :  { %v1032_v33 = vadd.f32 %v1030_v20, %v1026_v27  ;;  %v1033_v29 = vmax.f32 %v1031_v28, 0.0 }
 0x676   :  { %v1034_v30 = vmax.f32 %v1032_v33, 0.0  ;;  %v1037_v32 = vrot.slane %v1033_v29, 4 }
 0x678   :  { %v1045_v31 = vpack.c.bf16 %v1034_v30, %v1033_v29  ;;  %v1038_v34 = vrot.slane %v1034_v30, 4 }
 0x67a   :  { %1861 = vmatmul.mubr.bf16.vlgmr.msra.gmra.mrb[12].mxu1 %v1045_v31  ;;  %v1653_v35 = vpack.c.bf16 %v1038_v34, %v1037_v32 }
 0x67c   :  { %1654 = vmatprep.mubr.msk.bf16.mxu0 %vm2230_vm10, %v1653_v35 }
 0x67d   :  { %1278 = vmatmul.mubr.bf16.vlgmr.msra.gmra.mrb[12].mxu0 %v1983_v26 }
 0x74d   :  { %v1320_v36 = vpop.f32.mrb[12].mxu1 }
 0x74e   :  { %v1862_v43 = vpop.f32.mrb[13].mxu1 }
 0x74f   :  { %v1323_v44 = vpop.f32.mrb[14].mxu1 }
 0x750   :  { %v1769_v45 = vpop.f32.mrb[12].mxu0  ;;  %v1863_v46 = vpop.f32.mrb[15].mxu1 }
 0x751   :  { %v1770_v48 = vpop.f32.mrb[13].mxu0 }
 0x752   :  { %v1771_v49 = vadd.f32 %v1770_v48, %v1769_v45  ;;  %v1772_v50 = vpop.f32.mrb[14].mxu0 }
 0x753   :  { %v1773_v51 = vpop.f32.mrb[15].mxu0 }
 0x754   :  { %v1280_v52 = vadd.f32 %v1771_v49, %v1100_v47  ;;  %v1774_v58 = vadd.f32 %v1773_v51, %v1772_v50 }
 0x756   :  { %v1283_v37 = vadd.f32 %v1774_v58, %v1100_v47  ;;  %v1321_v53 = vadd.f32 %v1320_v36, %v1280_v52 }
 0x758   :  { %1327 = vadd.xlane.f32.xlu0 %v1321_v53  ;;  %v1324_v54 = vadd.f32 %v1323_v44, %v1283_v37 }
 0x75a   :  { %1329 = vadd.xlane.f32.xlu1 %v1324_v54 }
 0x7e5   :  { %v1328_v55 = vpop.xlane.xlu0 %1327 }
 0x7e6   :  { %v1331_v56 = vmul.f32 0.03125, %v1328_v55 }
 0x7e7   :  { %v1330_v57 = vpop.xlane.xlu1 %1329 }
 0x7e8   :  { %v1333_v39 = vsub.f32 %v1321_v53, %v1331_v56  ;;  %v1332_v59 = vmul.f32 0.03125, %v1330_v57 }
 0x7ea   :  { %v1334_v60 = vsub.f32 %v1324_v54, %v1332_v59  ;;  %v1335_v63 = vmul.f32 %v1333_v39, %v1333_v39 }
 0x7ec   :  { %v1337_v38 = vmul.f32 %v2132_v61, %v1335_v63  ;;  %v1336_v0 = vmul.f32 %v1334_v60, %v1334_v60 }
 0x7ee   :  { %1339 = vadd.xlane.f32.xlu0 %v1337_v38  ;;  %v1338_v2 = vmul.f32 %v2132_v61, %v1336_v0 }
 0x7f0   :  { %1341 = vadd.xlane.f32.xlu1 %v1338_v2 }
 0x87b   :  { %v1340_v3 = vpop.xlane.xlu0 %1339 }
 0x87c   :  { %v1343_v4 = vmul.f32 0.03125, %v1340_v3 }
 0x87d   :  { %v1342_v5 = vpop.xlane.xlu1 %1341 }
 0x87e   :  { %v1345_v6 = vadd.f32 1e-05, %v1343_v4  ;;  %v1344_v7 = vmul.f32 0.03125, %v1342_v5 }
 0x880   :  { %1977 = vrsqrt.f32 %v1345_v6  ;;  %v1346_v8 = vadd.f32 1e-05, %v1344_v7 }
 0x882   :  { %1979 = vrsqrt.f32 %v1346_v8 }
 0x88a   :  { %v1978_v10 = vpop.eup %1977 }
 0x88b   :  { %v1349_v14 = vmul.f32 %v1978_v10, %v1333_v39 }
 0x88c   :  { %v1980_v62 = vpop.eup %1979 }
 0x88d   :  { %v1355_v15 = vmul.f32 %v1354_v9, %v1349_v14  ;;  %v1350_v16 = vmul.f32 %v1980_v62, %v1334_v60 }
 0x88f   :  { %v1361_v17 = vadd.f32 %v1360_v11, %v1355_v15  ;;  %v1356_v61 = vmul.f32 %v1354_v9, %v1350_v16 }
 0x891   :  { %v1363_v18 = vmax.f32 %v1361_v17, 0.0  ;;  %v1362_v19 = vadd.f32 %v1360_v11, %v1356_v61 }
 0x893   :  { %v1364_v25 = vmax.f32 %v1362_v19, 0.0  ;;  %v1365_v1 = vadd.f32 %v1363_v18, %v2344_v12 }
 0x895   :  { %v1366_v20 = vadd.f32 %v1364_v25, %v2347_v13 }
 0x897   :  { %v1658_v21 = vpack.c.bf16 %v1366_v20, %v1365_v1 }
 0x899   :  { %1659 = vst [vmem:[%s2481_s3] sm:$0xff] %v1658_v21  }

</bundles_post_ra>
